<compile_context>
chip_gen: v5e
topology: v5e:2x2
jax: 0.10.0
libtpu: 0.0.40
codegen_flags: <defaults>
</compile_context>

<pallas_src>
import functools
import math

import jax
import jax.numpy as jnp
from jax.experimental import pallas as pl
from jax.experimental.pallas import tpu as pltpu


# ---------------------------------------------------------------------------
# Pallas kernels
# ---------------------------------------------------------------------------

def _inception_block_kernel(x_ref, wb_ref, wbr_ref, wpool_ref, y_ref, stats_ref,
                            *, L, kmax):
    """Fused InceptionBlock1d conv stage for one batch sample.

    x_ref     : (1, L, Cin)        input sample
    wb_ref    : (Cin, Cb)          1x1 bottleneck weights
    wbr_ref   : (kmax*Cb, B*nf)    all branch conv weights, zero-padded to the
                                   max kernel size and concatenated over Cout
    wpool_ref : (Cin, nf)          1x1 conv after the maxpool branch
    y_ref     : (1, L, C_out)      concatenated branch outputs (pre-BN)
    stats_ref : (2, C_out)         [sum; sum-of-squares], accumulated over grid
    """
    n = pl.program_id(0)
    x = x_ref[0]                                                 # (L, Cin)

    # 1x1 bottleneck == channel matmul on the MXU.
    b = jnp.dot(x, wb_ref[...], preferred_element_type=jnp.float32)   # (L, Cb)
    cb = b.shape[1]

    # All ks-branches as ONE im2col matmul ('same' zero padding built in VMEM).
    pad = (kmax - 1) // 2
    if pad > 0:
        zeros = jnp.zeros((pad, cb), jnp.float32)
        bp = jnp.concatenate([zeros, b, zeros], axis=0)          # (L + 2*pad, Cb)
    else:
        bp = b
    slab = jnp.concatenate([bp[k:k + L, :] for k in range(kmax)], axis=1)
    ybr = jnp.dot(slab, wbr_ref[...], preferred_element_type=jnp.float32)

    # MaxPool1d(3, stride 1, pad 1) on the raw input, then 1x1 conv.
    ninf = jnp.full((1, x.shape[1]), -jnp.inf, dtype=x.dtype)
    xp = jnp.concatenate([ninf, x, ninf], axis=0)                # (L + 2, Cin)
    mp = jnp.maximum(jnp.maximum(xp[0:L, :], xp[1:L + 1, :]), xp[2:L + 2, :])
    ypool = jnp.dot(mp, wpool_ref[...], preferred_element_type=jnp.float32)

    # Channel concat -> single lane-dense store, plus BatchNorm statistics.
    y = jnp.concatenate([ybr, ypool], axis=1)                    # (L, C_out)
    y_ref[0] = y.astype(y_ref.dtype)

    tile_stats = jnp.concatenate(
        [jnp.sum(y, axis=0, keepdims=True),
         jnp.sum(y * y, axis=0, keepdims=True)], axis=0)         # (2, C_out)

    @pl.when(n == 0)
    def _():
        stats_ref[...] = jnp.zeros_like(stats_ref)

    stats_ref[...] += tile_stats


def _conv1x1_stats_kernel(x_ref, w_ref, y_ref, stats_ref):
    """Shortcut1d conv stage: y = x @ w (1x1 conv) plus BatchNorm statistics."""
    n = pl.program_id(0)
    y = jnp.dot(x_ref[0], w_ref[...], preferred_element_type=jnp.float32)
    y_ref[0] = y.astype(y_ref.dtype)
    tile_stats = jnp.concatenate(
        [jnp.sum(y, axis=0, keepdims=True),
         jnp.sum(y * y, axis=0, keepdims=True)], axis=0)

    @pl.when(n == 0)
    def _():
        stats_ref[...] = jnp.zeros_like(stats_ref)

    stats_ref[...] += tile_stats


def _scale_shift_relu_kernel(y_ref, sc_ref, sh_ref, o_ref):
    """BatchNorm (folded to scale/shift) + ReLU on a row tile."""
    o_ref[...] = jnp.maximum(y_ref[...] * sc_ref[...] + sh_ref[...], 0.0)


def _scale_shift_add_relu_kernel(y_ref, r_ref, sc_ref, sh_ref, o_ref):
    """Shortcut tail: ReLU(residual + BN(y)) with BN folded to scale/shift."""
    o_ref[...] = jnp.maximum(
        r_ref[...] + y_ref[...] * sc_ref[...] + sh_ref[...], 0.0)


# ---------------------------------------------------------------------------
# Pallas wrappers
# ---------------------------------------------------------------------------

def inception_block_conv(x, p):
    """Fused conv stage of one inception block. x: (N, L, Cin) -> (y, stats)."""
    N, L, Cin = x.shape
    wb, wbr, wp = p["bottleneck_w"], p["branch_w"], p["pool_w"]
    cb = wb.shape[1]
    kmax = wbr.shape[0] // cb
    c_out = wbr.shape[1] + wp.shape[1]
    kern = functools.partial(_inception_block_kernel, L=L, kmax=kmax)
    return pl.pallas_call(
        kern,
        grid=(N,),
        in_specs=[
            pl.BlockSpec((1, L, Cin), lambda n: (n, 0, 0)),
            pl.BlockSpec(wb.shape, lambda n: (0, 0)),
            pl.BlockSpec(wbr.shape, lambda n: (0, 0)),
            pl.BlockSpec(wp.shape, lambda n: (0, 0)),
        ],
        out_specs=(
            pl.BlockSpec((1, L, c_out), lambda n: (n, 0, 0)),
            pl.BlockSpec((2, c_out), lambda n: (0, 0)),
        ),
        out_shape=(
            jax.ShapeDtypeStruct((N, L, c_out), x.dtype),
            jax.ShapeDtypeStruct((2, c_out), jnp.float32),
        ),
        # Stats output accumulates across the batch axis -> "arbitrary".
        compiler_params=pltpu.CompilerParams(
            dimension_semantics=("arbitrary",)),
    )(x, wb, wbr, wp)


def conv1x1_stats(x, w):
    """Shortcut 1x1 conv + BN statistics. x: (N, L, Cin), w: (Cin, Cout)."""
    N, L, Cin = x.shape
    Cout = w.shape[1]
    return pl.pallas_call(
        _conv1x1_stats_kernel,
        grid=(N,),
        in_specs=[
            pl.BlockSpec((1, L, Cin), lambda n: (n, 0, 0)),
            pl.BlockSpec((Cin, Cout), lambda n: (0, 0)),
        ],
        out_specs=(
            pl.BlockSpec((1, L, Cout), lambda n: (n, 0, 0)),
            pl.BlockSpec((2, Cout), lambda n: (0, 0)),
        ),
        out_shape=(
            jax.ShapeDtypeStruct((N, L, Cout), x.dtype),
            jax.ShapeDtypeStruct((2, Cout), jnp.float32),
        ),
        compiler_params=pltpu.CompilerParams(
            dimension_semantics=("arbitrary",)),
    )(x, w)


def _fold_bn(stats, count, gamma, beta, eps):
    """Fold training-mode BatchNorm (batch stats) into per-channel scale/shift."""
    mean = stats[0] / count
    var = jnp.maximum(stats[1] / count - mean * mean, 0.0)   # biased variance
    scale = gamma * jax.lax.rsqrt(var + eps)
    shift = beta - mean * scale
    return scale, shift


def _row_tile(rows):
    return rows if rows <= 1024 else 512


def bn_relu_apply(y, stats, gamma, beta, eps=1e-5):
    """ReLU(BN(y)) with BN batch stats taken from `stats`. y: (N, L, C)."""
    N, L, C = y.shape
    scale, shift = _fold_bn(stats, N * L, gamma, beta, eps)
    R = N * L
    TR = _row_tile(R)
    out = pl.pallas_call(
        _scale_shift_relu_kernel,
        grid=(pl.cdiv(R, TR),),
        in_specs=[
            pl.BlockSpec((TR, C), lambda i: (i, 0)),
            pl.BlockSpec((1, C), lambda i: (0, 0)),
            pl.BlockSpec((1, C), lambda i: (0, 0)),
        ],
        out_specs=pl.BlockSpec((TR, C), lambda i: (i, 0)),
        out_shape=jax.ShapeDtypeStruct((R, C), y.dtype),
        compiler_params=pltpu.CompilerParams(
            dimension_semantics=("parallel",)),
    )(y.reshape(R, C), scale.reshape(1, C), shift.reshape(1, C))
    return out.reshape(N, L, C)


def bn_add_relu_apply(s, stats, res, gamma, beta, eps=1e-5):
    """ReLU(res + BN(s)). s, res: (N, L, C)."""
    N, L, C = s.shape
    scale, shift = _fold_bn(stats, N * L, gamma, beta, eps)
    R = N * L
    TR = _row_tile(R)
    out = pl.pallas_call(
        _scale_shift_add_relu_kernel,
        grid=(pl.cdiv(R, TR),),
        in_specs=[
            pl.BlockSpec((TR, C), lambda i: (i, 0)),
            pl.BlockSpec((TR, C), lambda i: (i, 0)),
            pl.BlockSpec((1, C), lambda i: (0, 0)),
            pl.BlockSpec((1, C), lambda i: (0, 0)),
        ],
        out_specs=pl.BlockSpec((TR, C), lambda i: (i, 0)),
        out_shape=jax.ShapeDtypeStruct((R, C), s.dtype),
        compiler_params=pltpu.CompilerParams(
            dimension_semantics=("parallel",)),
    )(s.reshape(R, C), res.reshape(R, C),
      scale.reshape(1, C), shift.reshape(1, C))
    return out.reshape(N, L, C)


# ---------------------------------------------------------------------------
# Module logic (plain-JAX glue composing the Pallas kernels)
# ---------------------------------------------------------------------------

def inception_backbone_nlc(x, params, depth, use_residual):
    input_res = x
    for d in range(depth):
        bp = params["blocks"][d]
        y, stats = inception_block_conv(x, bp)
        x = bn_relu_apply(y, stats, bp["bn_gamma"], bp["bn_beta"])
        if use_residual and d % 3 == 2:
            sp = params["shortcuts"][d // 3]
            s, s_stats = conv1x1_stats(input_res, sp["sk_w"])
            x = bn_add_relu_apply(s, s_stats, x, sp["sk_gamma"], sp["sk_beta"])
            input_res = x
    return x


def inception_backbone(x_ncl, params, depth, use_residual):
    """PyTorch-compatible interface: x_ncl (N, C, L) -> (N, C_out, L)."""
    x = jnp.transpose(x_ncl, (0, 2, 1))                    # NCL -> NLC
    y = inception_backbone_nlc(x, params, depth, use_residual)
    return jnp.transpose(y, (0, 2, 1))                     # NLC -> NCL


# ---------------------------------------------------------------------------
# Deterministic parameter initialization (synthetic; no checkpoint load)
# ---------------------------------------------------------------------------

def _init_conv_w(key, K, cin, cout):
    bound = 1.0 / math.sqrt(cin * K)
    return jax.random.uniform(key, (K, cin, cout), jnp.float32, -bound, bound)


def _combine_branch_weights(conv_ws, kmax, cb, nf):
    """Zero-pad each branch's (K_i, Cb, nf) weights to kmax taps (centered) and
    concatenate over the output-channel axis -> (kmax*Cb, B*nf)."""
    n_branches = len(conv_ws)
    w_all = jnp.zeros((kmax, cb, n_branches * nf), jnp.float32)
    for i, w in enumerate(conv_ws):
        k_i = w.shape[0]
        off = (kmax - k_i) // 2
        w_all = w_all.at[off:off + k_i, :, i * nf:(i + 1) * nf].set(w)
    return w_all.reshape(kmax * cb, n_branches * nf)


def _init_block_params(key, ni, nb_filters, kss, bottleneck_size):
    # TODO(synk): bottleneck_size == 0 (NoOp bottleneck) path not implemented.
    assert bottleneck_size > 0
    assert all(k % 2 == 1 for k in kss), "kernel sizes must be odd (PyTorch 'same')"
    keys = jax.random.split(key, len(kss) + 2)
    cb = bottleneck_size
    conv_ws = [_init_conv_w(keys[1 + i], ks, cb, nb_filters)
               for i, ks in enumerate(kss)]
    kmax = max(kss)
    c_out = (len(kss) + 1) * nb_filters
    return {
        "bottleneck_w": _init_conv_w(keys[0], 1, ni, cb)[0],          # (ni, Cb)
        "conv_ws_raw": conv_ws,                                       # reference only
        "branch_w": _combine_branch_weights(conv_ws, kmax, cb, nb_filters),
        "pool_w": _init_conv_w(keys[len(kss) + 1], 1, ni, nb_filters)[0],
        "bn_gamma": jnp.ones((c_out,), jnp.float32),
        "bn_beta": jnp.zeros((c_out,), jnp.float32),
    }


def init_backbone_params(key, input_channels, kss, depth, bottleneck_size,
                         nb_filters):
    assert depth % 3 == 0
    n_ks = len(kss) + 1
    c_out = n_ks * nb_filters
    keys = jax.random.split(key, depth + depth // 3)
    blocks = []
    for d in range(depth):
        ni = input_channels if d == 0 else c_out
        blocks.append(_init_block_params(keys[d], ni, nb_filters, kss,
                                         bottleneck_size))
    shortcuts = []
    for s in range(depth // 3):
        ni = input_channels if s == 0 else c_out
        shortcuts.append({
            "sk_w": _init_conv_w(keys[depth + s], 1, ni, c_out)[0],   # (ni, C_out)
            "sk_gamma": jnp.ones((c_out,), jnp.float32),
            "sk_beta": jnp.zeros((c_out,), jnp.float32),
        })
    return {"blocks": blocks, "shortcuts": shortcuts}


# ---------------------------------------------------------------------------
# Pure-JAX reference (for a loose numerical sanity check)
# ---------------------------------------------------------------------------

_HI = jax.lax.Precision.HIGHEST


def _ref_conv1d(x, w):  # x: (N, L, Cin), w: (K, Cin, Cout), 'same' padding
    K = w.shape[0]
    pad = (K - 1) // 2
    L = x.shape[1]
    xp = jnp.pad(x, ((0, 0), (pad, pad), (0, 0)))
    out = 0.0
    for k in range(K):
        out = out + jnp.einsum("nlc,cf->nlf", xp[:, k:k + L, :], w[k],
                               precision=_HI)
    return out


def _ref_maxpool3(x):
    N, L, C = x.shape
    xp = jnp.pad(x, ((0, 0), (1, 1), (0, 0)), constant_values=-jnp.inf)
    return jnp.maximum(jnp.maximum(xp[:, 0:L], xp[:, 1:L + 1]), xp[:, 2:L + 2])


def _ref_bn(y, gamma, beta, eps=1e-5):
    mean = jnp.mean(y, axis=(0, 1), keepdims=True)
    var = jnp.mean((y - mean) ** 2, axis=(0, 1), keepdims=True)
    return (y - mean) * jax.lax.rsqrt(var + eps) * gamma + beta


def _ref_block(x, p):
    b = _ref_conv1d(x, p["bottleneck_w"][None])
    branches = [_ref_conv1d(b, w) for w in p["conv_ws_raw"]]
    branches.append(_ref_conv1d(_ref_maxpool3(x), p["pool_w"][None]))
    y = jnp.concatenate(branches, axis=-1)
    return jnp.maximum(_ref_bn(y, p["bn_gamma"], p["bn_beta"]), 0.0)


def _ref_shortcut(inp, out, p):
    s = _ref_conv1d(inp, p["sk_w"][None])
    return jnp.maximum(out + _ref_bn(s, p["sk_gamma"], p["sk_beta"]), 0.0)


def _ref_backbone(x, params, depth, use_residual):
    input_res = x
    for d in range(depth):
        x = _ref_block(x, params["blocks"][d])
        if use_residual and d % 3 == 2:
            x = _ref_shortcut(input_res, x, params["shortcuts"][d // 3])
            input_res = x
    return x


# ---------------------------------------------------------------------------
# Demo
# ---------------------------------------------------------------------------

if __name__ == "__main__":
    # Small but lane-friendly configuration: C_out = (3+1)*32 = 128 channels.
    input_channels = 4
    kss = [7, 5, 3]
    depth = 3
    bottleneck_size = 32
    nb_filters = 32
    use_residual = True
    N, L = 2, 64

    key = jax.random.PRNGKey(0)
    kx, kp = jax.random.split(key)
    x = jax.random.normal(kx, (N, input_channels, L), jnp.float32)  # NCL

    params = init_backbone_params(kp, input_channels, kss, depth,
                                  bottleneck_size, nb_filters)

    fwd = jax.jit(functools.partial(inception_backbone, depth=depth,
                                    use_residual=use_residual))
    y = fwd(x, params)
    jax.block_until_ready(y)

    expected_c = (len(kss) + 1) * nb_filters
    assert y.shape == (N, expected_c, L), y.shape
    assert bool(jnp.all(jnp.isfinite(y)))

    # Loose-tolerance check against a pure-JAX reference (MXU default matmul
    # precision differs from the XLA reference path).
    y_ref = jnp.transpose(
        _ref_backbone(jnp.transpose(x, (0, 2, 1)), params, depth, use_residual),
        (0, 2, 1))
    max_err = float(jnp.max(jnp.abs(y - y_ref)))
    assert max_err < 1e-1, f"max abs err vs reference: {max_err}"

    print("KERNEL_OK")
</pallas_src>

<mosaic_0001>
module attributes {stable_mosaic.version = 11 : i64} {
  func.func @_scale_shift_relu_kernel(%arg0: i32, %arg1: memref<128x128xf32, #tpu.memory_space<vmem>>, %arg2: memref<1x128xf32, #tpu.memory_space<vmem>>, %arg3: memref<1x128xf32, #tpu.memory_space<vmem>>, %arg4: memref<128x128xf32, #tpu.memory_space<vmem>>) attributes {dimension_semantics = [#tpu.dimension_semantics<parallel>], iteration_bounds = array<i64: 1>, scalar_prefetch = 0 : i64, scratch_operands = 0 : i64, tpu.core_type = #tpu.core_type<tc>, window_params = [{transform_indices = @transform_0, window_bounds = array<i64: 128, 128>}, {pipeline_mode = #tpu.pipeline_mode<synchronous>, transform_indices = @transform_1, window_bounds = array<i64: 1, 128>}, {pipeline_mode = #tpu.pipeline_mode<synchronous>, transform_indices = @transform_2, window_bounds = array<i64: 1, 128>}, {transform_indices = @transform_3, window_bounds = array<i64: 128, 128>}]} {
    %c0 = arith.constant 0 : index
    %c0_0 = arith.constant 0 : index
    %0 = vector.load %arg1[%c0, %c0_0] : memref<128x128xf32, #tpu.memory_space<vmem>>, vector<128x128xf32>
    %c0_1 = arith.constant 0 : index
    %c0_2 = arith.constant 0 : index
    %1 = vector.load %arg2[%c0_1, %c0_2] : memref<1x128xf32, #tpu.memory_space<vmem>>, vector<1x128xf32>
    %2 = vector.broadcast %1 : vector<1x128xf32> to vector<128x128xf32>
    %3 = arith.mulf %0, %2 : vector<128x128xf32>
    %c0_3 = arith.constant 0 : index
    %c0_4 = arith.constant 0 : index
    %4 = vector.load %arg3[%c0_3, %c0_4] : memref<1x128xf32, #tpu.memory_space<vmem>>, vector<1x128xf32>
    %5 = vector.broadcast %4 : vector<1x128xf32> to vector<128x128xf32>
    %6 = arith.addf %3, %5 : vector<128x128xf32>
    %cst = arith.constant 0.000000e+00 : f32
    %7 = vector.broadcast %cst : f32 to vector<128x128xf32>
    %8 = arith.maximumf %6, %7 : vector<128x128xf32>
    %c0_5 = arith.constant 0 : index
    %c0_6 = arith.constant 0 : index
    %9 = vector.load %arg4[%c0_5, %c0_6] : memref<128x128xf32, #tpu.memory_space<vmem>>, vector<128x128xf32>
    tpu.vector_store %arg4[%c0_5, %c0_6], %8 {strides = array<i32>} : memref<128x128xf32, #tpu.memory_space<vmem>>, vector<128x128xf32>,
    return
  }
  func.func @transform_0(%arg0: i32) -> (i32, i32) {
    %c0_i32 = arith.constant 0 : i32
    %c0_i32_0 = arith.constant 0 : i32
    return %arg0, %c0_i32 : i32, i32
  }
  func.func @transform_1(%arg0: i32) -> (i32, i32) {
    %c0_i32 = arith.constant 0 : i32
    %c0_i32_0 = arith.constant 0 : i32
    %c0_i32_1 = arith.constant 0 : i32
    return %c0_i32, %c0_i32_0 : i32, i32
  }
  func.func @transform_2(%arg0: i32) -> (i32, i32) {
    %c0_i32 = arith.constant 0 : i32
    %c0_i32_0 = arith.constant 0 : i32
    %c0_i32_1 = arith.constant 0 : i32
    return %c0_i32, %c0_i32_0 : i32, i32
  }
  func.func @transform_3(%arg0: i32) -> (i32, i32) {
    %c0_i32 = arith.constant 0 : i32
    %c0_i32_0 = arith.constant 0 : i32
    return %arg0, %c0_i32 : i32, i32
  }
}

module attributes {stable_mosaic.version = 11 : i64} {
  func.func @_inception_block_kernel(%arg0: i32, %arg1: memref<1x64x4xf32, #tpu.memory_space<vmem>>, %arg2: memref<4x32xf32, #tpu.memory_space<vmem>>, %arg3: memref<224x96xf32, #tpu.memory_space<vmem>>, %arg4: memref<4x32xf32, #tpu.memory_space<vmem>>, %arg5: memref<1x64x128xf32, #tpu.memory_space<vmem>>, %arg6: memref<2x128xf32, #tpu.memory_space<vmem>>) attributes {dimension_semantics = [#tpu.dimension_semantics<arbitrary>], iteration_bounds = array<i64: 2>, scalar_prefetch = 0 : i64, scratch_operands = 0 : i64, tpu.core_type = #tpu.core_type<tc>, window_params = [{transform_indices = @transform_0, window_bounds = array<i64: 1, 64, 4>}, {pipeline_mode = #tpu.pipeline_mode<synchronous>, transform_indices = @transform_1, window_bounds = array<i64: 4, 32>}, {pipeline_mode = #tpu.pipeline_mode<synchronous>, transform_indices = @transform_2, window_bounds = array<i64: 224, 96>}, {pipeline_mode = #tpu.pipeline_mode<synchronous>, transform_indices = @transform_3, window_bounds = array<i64: 4, 32>}, {transform_indices = @transform_4, window_bounds = array<i64: 1, 64, 128>}, {pipeline_mode = #tpu.pipeline_mode<synchronous>, transform_indices = @transform_5, window_bounds = array<i64: 2, 128>}]} {
    %c0 = arith.constant 0 : index
    %c0_0 = arith.constant 0 : index
    %c0_1 = arith.constant 0 : index
    %0 = vector.load %arg1[%c0, %c0_0, %c0_1] : memref<1x64x4xf32, #tpu.memory_space<vmem>>, vector<1x64x4xf32>
    %1 = vector.shape_cast %0 : vector<1x64x4xf32> to vector<64x4xf32>
    %c0_2 = arith.constant 0 : index
    %c0_3 = arith.constant 0 : index
    %2 = vector.load %arg2[%c0_2, %c0_3] : memref<4x32xf32, #tpu.memory_space<vmem>>, vector<4x32xf32>
    %cst = arith.constant dense<0.000000e+00> : vector<64x32xf32>
    %3 = tpu.matmul %1, %2, %cst {dimension_numbers = #tpu.dot_dimension_numbers<[1], [0], [0], [1], [0, 0, 1, 1], [], []>} : vector<64x4xf32>, vector<4x32xf32>, vector<64x32xf32> -> vector<64x32xf32>
    %cst_4 = arith.constant 0.000000e+00 : f32
    %4 = vector.broadcast %cst_4 : f32 to vector<3x32xf32>
    %5 = tpu.concatenate %4, %3, %4 in 0 : vector<3x32xf32>, vector<64x32xf32>, vector<3x32xf32> -> vector<70x32xf32>
    %6 = vector.extract_strided_slice %5 {offsets = [0, 0], sizes = [64, 32], strides = [1, 1]} : vector<70x32xf32> to vector<64x32xf32>
    %7 = vector.extract_strided_slice %5 {offsets = [1, 0], sizes = [64, 32], strides = [1, 1]} : vector<70x32xf32> to vector<64x32xf32>
    %8 = vector.extract_strided_slice %5 {offsets = [2, 0], sizes = [64, 32], strides = [1, 1]} : vector<70x32xf32> to vector<64x32xf32>
    %9 = vector.extract_strided_slice %5 {offsets = [3, 0], sizes = [64, 32], strides = [1, 1]} : vector<70x32xf32> to vector<64x32xf32>
    %10 = vector.extract_strided_slice %5 {offsets = [4, 0], sizes = [64, 32], strides = [1, 1]} : vector<70x32xf32> to vector<64x32xf32>
    %11 = vector.extract_strided_slice %5 {offsets = [5, 0], sizes = [64, 32], strides = [1, 1]} : vector<70x32xf32> to vector<64x32xf32>
    %12 = vector.extract_strided_slice %5 {offsets = [6, 0], sizes = [64, 32], strides = [1, 1]} : vector<70x32xf32> to vector<64x32xf32>
    %13 = tpu.concatenate %6, %7, %8, %9, %10, %11, %12 in 1 : vector<64x32xf32>, vector<64x32xf32>, vector<64x32xf32>, vector<64x32xf32>, vector<64x32xf32>, vector<64x32xf32>, vector<64x32xf32> -> vector<64x224xf32>
    %c0_5 = arith.constant 0 : index
    %c0_6 = arith.constant 0 : index
    %14 = vector.load %arg3[%c0_5, %c0_6] : memref<224x96xf32, #tpu.memory_space<vmem>>, vector<224x96xf32>
    %cst_7 = arith.constant dense<0.000000e+00> : vector<64x96xf32>
    %15 = tpu.matmul %13, %14, %cst_7 {dimension_numbers = #tpu.dot_dimension_numbers<[1], [0], [0], [1], [0, 0, 1, 1], [], []>} : vector<64x224xf32>, vector<224x96xf32>, vector<64x96xf32> -> vector<64x96xf32>
    %cst_8 = arith.constant 0xFF800000 : f32
    %16 = vector.broadcast %cst_8 : f32 to vector<1x4xf32>
    %17 = tpu.concatenate %16, %1, %16 in 0 : vector<1x4xf32>, vector<64x4xf32>, vector<1x4xf32> -> vector<66x4xf32>
    %18 = vector.extract_strided_slice %17 {offsets = [0, 0], sizes = [64, 4], strides = [1, 1]} : vector<66x4xf32> to vector<64x4xf32>
    %19 = vector.extract_strided_slice %17 {offsets = [1, 0], sizes = [64, 4], strides = [1, 1]} : vector<66x4xf32> to vector<64x4xf32>
    %20 = arith.maximumf %18, %19 : vector<64x4xf32>
    %21 = vector.extract_strided_slice %17 {offsets = [2, 0], sizes = [64, 4], strides = [1, 1]} : vector<66x4xf32> to vector<64x4xf32>
    %22 = arith.maximumf %20, %21 : vector<64x4xf32>
    %c0_9 = arith.constant 0 : index
    %c0_10 = arith.constant 0 : index
    %23 = vector.load %arg4[%c0_9, %c0_10] : memref<4x32xf32, #tpu.memory_space<vmem>>, vector<4x32xf32>
    %cst_11 = arith.constant dense<0.000000e+00> : vector<64x32xf32>
    %24 = tpu.matmul %22, %23, %cst_11 {dimension_numbers = #tpu.dot_dimension_numbers<[1], [0], [0], [1], [0, 0, 1, 1], [], []>} : vector<64x4xf32>, vector<4x32xf32>, vector<64x32xf32> -> vector<64x32xf32>
    %25 = tpu.concatenate %15, %24 in 1 : vector<64x96xf32>, vector<64x32xf32> -> vector<64x128xf32>
    %c0_12 = arith.constant 0 : index
    %c0_13 = arith.constant 0 : index
    %c0_14 = arith.constant 0 : index
    %26 = vector.load %arg5[%c0_12, %c0_13, %c0_14] : memref<1x64x128xf32, #tpu.memory_space<vmem>>, vector<1x64x128xf32>
    %27 = vector.shape_cast %26 : vector<1x64x128xf32> to vector<64x128xf32>
    %28 = vector.shape_cast %25 : vector<64x128xf32> to vector<1x64x128xf32>
    tpu.vector_store %arg5[%c0_12, %c0_13, %c0_14], %28 {strides = array<i32>} : memref<1x64x128xf32, #tpu.memory_space<vmem>>, vector<1x64x128xf32>,
    %cst_15 = arith.constant dense<0.000000e+00> : vector<128xf32>
    %29 = vector.multi_reduction <add>, %25, %cst_15 [0] : vector<64x128xf32> to vector<128xf32>
    %30 = vector.shape_cast %29 : vector<128xf32> to vector<1x128xf32>
    %31 = arith.mulf %25, %25 : vector<64x128xf32>
    %cst_16 = arith.constant dense<0.000000e+00> : vector<128xf32>
    %32 = vector.multi_reduction <add>, %31, %cst_16 [0] : vector<64x128xf32> to vector<128xf32>
    %33 = vector.shape_cast %32 : vector<128xf32> to vector<1x128xf32>
    %34 = tpu.concatenate %30, %33 in 0 : vector<1x128xf32>, vector<1x128xf32> -> vector<2x128xf32>
    %c0_i32 = arith.constant 0 : i32
    %35 = arith.cmpi eq, %arg0, %c0_i32 : i32
    %36 = arith.extui %35 : i1 to i32
    %c0_i32_17 = arith.constant 0 : i32
    %37 = arith.cmpi ne, %36, %c0_i32_17 : i32
    scf.if %37 {
      %cst_22 = arith.constant 0.000000e+00 : f32
      %41 = vector.broadcast %cst_22 : f32 to vector<2x128xf32>
      %c0_23 = arith.constant 0 : index
      %c0_24 = arith.constant 0 : index
      %42 = vector.load %arg6[%c0_23, %c0_24] : memref<2x128xf32, #tpu.memory_space<vmem>>, vector<2x128xf32>
      tpu.vector_store %arg6[%c0_23, %c0_24], %41 {strides = array<i32>} : memref<2x128xf32, #tpu.memory_space<vmem>>, vector<2x128xf32>,
    } else {
    }
    %c0_18 = arith.constant 0 : index
    %c0_19 = arith.constant 0 : index
    %38 = vector.load %arg6[%c0_18, %c0_19] : memref<2x128xf32, #tpu.memory_space<vmem>>, vector<2x128xf32>
    %39 = arith.addf %38, %34 : vector<2x128xf32>
    %c0_20 = arith.constant 0 : index
    %c0_21 = arith.constant 0 : index
    %40 = vector.load %arg6[%c0_20, %c0_21] : memref<2x128xf32, #tpu.memory_space<vmem>>, vector<2x128xf32>
    tpu.vector_store %arg6[%c0_20, %c0_21], %39 {strides = array<i32>} : memref<2x128xf32, #tpu.memory_space<vmem>>, vector<2x128xf32>,
    return
  }
  func.func @transform_0(%arg0: i32) -> (i32, i32, i32) {
    %c0_i32 = arith.constant 0 : i32
    %c0_i32_0 = arith.constant 0 : i32
    %c0_i32_1 = arith.constant 0 : i32
    return %arg0, %c0_i32, %c0_i32_0 : i32, i32, i32
  }
  func.func @transform_1(%arg0: i32) -> (i32, i32) {
    %c0_i32 = arith.constant 0 : i32
    %c0_i32_0 = arith.constant 0 : i32
    %c0_i32_1 = arith.constant 0 : i32
    return %c0_i32, %c0_i32_0 : i32, i32
  }
  func.func @transform_2(%arg0: i32) -> (i32, i32) {
    %c0_i32 = arith.constant 0 : i32
    %c0_i32_0 = arith.constant 0 : i32
    %c0_i32_1 = arith.constant 0 : i32
    return %c0_i32, %c0_i32_0 : i32, i32
  }
  func.func @transform_3(%arg0: i32) -> (i32, i32) {
    %c0_i32 = arith.constant 0 : i32
    %c0_i32_0 = arith.constant 0 : i32
    %c0_i32_1 = arith.constant 0 : i32
    return %c0_i32, %c0_i32_0 : i32, i32
  }
  func.func @transform_4(%arg0: i32) -> (i32, i32, i32) {
    %c0_i32 = arith.constant 0 : i32
    %c0_i32_0 = arith.constant 0 : i32
    %c0_i32_1 = arith.constant 0 : i32
    return %arg0, %c0_i32, %c0_i32_0 : i32, i32, i32
  }
  func.func @transform_5(%arg0: i32) -> (i32, i32) {
    %c0_i32 = arith.constant 0 : i32
    %c0_i32_0 = arith.constant 0 : i32
    %c0_i32_1 = arith.constant 0 : i32
    return %c0_i32, %c0_i32_0 : i32, i32
  }
}

module attributes {stable_mosaic.version = 11 : i64} {
  func.func @_conv1x1_stats_kernel(%arg0: i32, %arg1: memref<1x64x4xf32, #tpu.memory_space<vmem>>, %arg2: memref<4x128xf32, #tpu.memory_space<vmem>>, %arg3: memref<1x64x128xf32, #tpu.memory_space<vmem>>, %arg4: memref<2x128xf32, #tpu.memory_space<vmem>>) attributes {dimension_semantics = [#tpu.dimension_semantics<arbitrary>], iteration_bounds = array<i64: 2>, scalar_prefetch = 0 : i64, scratch_operands = 0 : i64, tpu.core_type = #tpu.core_type<tc>, window_params = [{transform_indices = @transform_0, window_bounds = array<i64: 1, 64, 4>}, {pipeline_mode = #tpu.pipeline_mode<synchronous>, transform_indices = @transform_1, window_bounds = array<i64: 4, 128>}, {transform_indices = @transform_2, window_bounds = array<i64: 1, 64, 128>}, {pipeline_mode = #tpu.pipeline_mode<synchronous>, transform_indices = @transform_3, window_bounds = array<i64: 2, 128>}]} {
    %c0 = arith.constant 0 : index
    %c0_0 = arith.constant 0 : index
    %c0_1 = arith.constant 0 : index
    %0 = vector.load %arg1[%c0, %c0_0, %c0_1] : memref<1x64x4xf32, #tpu.memory_space<vmem>>, vector<1x64x4xf32>
    %1 = vector.shape_cast %0 : vector<1x64x4xf32> to vector<64x4xf32>
    %c0_2 = arith.constant 0 : index
    %c0_3 = arith.constant 0 : index
    %2 = vector.load %arg2[%c0_2, %c0_3] : memref<4x128xf32, #tpu.memory_space<vmem>>, vector<4x128xf32>
    %cst = arith.constant dense<0.000000e+00> : vector<64x128xf32>
    %3 = tpu.matmul %1, %2, %cst {dimension_numbers = #tpu.dot_dimension_numbers<[1], [0], [0], [1], [0, 0, 1, 1], [], []>} : vector<64x4xf32>, vector<4x128xf32>, vector<64x128xf32> -> vector<64x128xf32>
    %c0_4 = arith.constant 0 : index
    %c0_5 = arith.constant 0 : index
    %c0_6 = arith.constant 0 : index
    %4 = vector.load %arg3[%c0_4, %c0_5, %c0_6] : memref<1x64x128xf32, #tpu.memory_space<vmem>>, vector<1x64x128xf32>
    %5 = vector.shape_cast %4 : vector<1x64x128xf32> to vector<64x128xf32>
    %6 = vector.shape_cast %3 : vector<64x128xf32> to vector<1x64x128xf32>
    tpu.vector_store %arg3[%c0_4, %c0_5, %c0_6], %6 {strides = array<i32>} : memref<1x64x128xf32, #tpu.memory_space<vmem>>, vector<1x64x128xf32>,
    %cst_7 = arith.constant dense<0.000000e+00> : vector<128xf32>
    %7 = vector.multi_reduction <add>, %3, %cst_7 [0] : vector<64x128xf32> to vector<128xf32>
    %8 = vector.shape_cast %7 : vector<128xf32> to vector<1x128xf32>
    %9 = arith.mulf %3, %3 : vector<64x128xf32>
    %cst_8 = arith.constant dense<0.000000e+00> : vector<128xf32>
    %10 = vector.multi_reduction <add>, %9, %cst_8 [0] : vector<64x128xf32> to vector<128xf32>
    %11 = vector.shape_cast %10 : vector<128xf32> to vector<1x128xf32>
    %12 = tpu.concatenate %8, %11 in 0 : vector<1x128xf32>, vector<1x128xf32> -> vector<2x128xf32>
    %c0_i32 = arith.constant 0 : i32
    %13 = arith.cmpi eq, %arg0, %c0_i32 : i32
    %14 = arith.extui %13 : i1 to i32
    %c0_i32_9 = arith.constant 0 : i32
    %15 = arith.cmpi ne, %14, %c0_i32_9 : i32
    scf.if %15 {
      %cst_14 = arith.constant 0.000000e+00 : f32
      %19 = vector.broadcast %cst_14 : f32 to vector<2x128xf32>
      %c0_15 = arith.constant 0 : index
      %c0_16 = arith.constant 0 : index
      %20 = vector.load %arg4[%c0_15, %c0_16] : memref<2x128xf32, #tpu.memory_space<vmem>>, vector<2x128xf32>
      tpu.vector_store %arg4[%c0_15, %c0_16], %19 {strides = array<i32>} : memref<2x128xf32, #tpu.memory_space<vmem>>, vector<2x128xf32>,
    } else {
    }
    %c0_10 = arith.constant 0 : index
    %c0_11 = arith.constant 0 : index
    %16 = vector.load %arg4[%c0_10, %c0_11] : memref<2x128xf32, #tpu.memory_space<vmem>>, vector<2x128xf32>
    %17 = arith.addf %16, %12 : vector<2x128xf32>
    %c0_12 = arith.constant 0 : index
    %c0_13 = arith.constant 0 : index
    %18 = vector.load %arg4[%c0_12, %c0_13] : memref<2x128xf32, #tpu.memory_space<vmem>>, vector<2x128xf32>
    tpu.vector_store %arg4[%c0_12, %c0_13], %17 {strides = array<i32>} : memref<2x128xf32, #tpu.memory_space<vmem>>, vector<2x128xf32>,
    return
  }
  func.func @transform_0(%arg0: i32) -> (i32, i32, i32) {
    %c0_i32 = arith.constant 0 : i32
    %c0_i32_0 = arith.constant 0 : i32
    %c0_i32_1 = arith.constant 0 : i32
    return %arg0, %c0_i32, %c0_i32_0 : i32, i32, i32
  }
  func.func @transform_1(%arg0: i32) -> (i32, i32) {
    %c0_i32 = arith.constant 0 : i32
    %c0_i32_0 = arith.constant 0 : i32
    %c0_i32_1 = arith.constant 0 : i32
    return %c0_i32, %c0_i32_0 : i32, i32
  }
  func.func @transform_2(%arg0: i32) -> (i32, i32, i32) {
    %c0_i32 = arith.constant 0 : i32
    %c0_i32_0 = arith.constant 0 : i32
    %c0_i32_1 = arith.constant 0 : i32
    return %arg0, %c0_i32, %c0_i32_0 : i32, i32, i32
  }
  func.func @transform_3(%arg0: i32) -> (i32, i32) {
    %c0_i32 = arith.constant 0 : i32
    %c0_i32_0 = arith.constant 0 : i32
    %c0_i32_1 = arith.constant 0 : i32
    return %c0_i32, %c0_i32_0 : i32, i32
  }
}

module attributes {stable_mosaic.version = 11 : i64} {
  func.func @_inception_block_kernel(%arg0: i32, %arg1: memref<1x64x128xf32, #tpu.memory_space<vmem>>, %arg2: memref<128x32xf32, #tpu.memory_space<vmem>>, %arg3: memref<224x96xf32, #tpu.memory_space<vmem>>, %arg4: memref<128x32xf32, #tpu.memory_space<vmem>>, %arg5: memref<1x64x128xf32, #tpu.memory_space<vmem>>, %arg6: memref<2x128xf32, #tpu.memory_space<vmem>>) attributes {dimension_semantics = [#tpu.dimension_semantics<arbitrary>], iteration_bounds = array<i64: 2>, scalar_prefetch = 0 : i64, scratch_operands = 0 : i64, tpu.core_type = #tpu.core_type<tc>, window_params = [{transform_indices = @transform_0, window_bounds = array<i64: 1, 64, 128>}, {pipeline_mode = #tpu.pipeline_mode<synchronous>, transform_indices = @transform_1, window_bounds = array<i64: 128, 32>}, {pipeline_mode = #tpu.pipeline_mode<synchronous>, transform_indices = @transform_2, window_bounds = array<i64: 224, 96>}, {pipeline_mode = #tpu.pipeline_mode<synchronous>, transform_indices = @transform_3, window_bounds = array<i64: 128, 32>}, {transform_indices = @transform_4, window_bounds = array<i64: 1, 64, 128>}, {pipeline_mode = #tpu.pipeline_mode<synchronous>, transform_indices = @transform_5, window_bounds = array<i64: 2, 128>}]} {
    %c0 = arith.constant 0 : index
    %c0_0 = arith.constant 0 : index
    %c0_1 = arith.constant 0 : index
    %0 = vector.load %arg1[%c0, %c0_0, %c0_1] : memref<1x64x128xf32, #tpu.memory_space<vmem>>, vector<1x64x128xf32>
    %1 = vector.shape_cast %0 : vector<1x64x128xf32> to vector<64x128xf32>
    %c0_2 = arith.constant 0 : index
    %c0_3 = arith.constant 0 : index
    %2 = vector.load %arg2[%c0_2, %c0_3] : memref<128x32xf32, #tpu.memory_space<vmem>>, vector<128x32xf32>
    %cst = arith.constant dense<0.000000e+00> : vector<64x32xf32>
    %3 = tpu.matmul %1, %2, %cst {dimension_numbers = #tpu.dot_dimension_numbers<[1], [0], [0], [1], [0, 0, 1, 1], [], []>} : vector<64x128xf32>, vector<128x32xf32>, vector<64x32xf32> -> vector<64x32xf32>
    %cst_4 = arith.constant 0.000000e+00 : f32
    %4 = vector.broadcast %cst_4 : f32 to vector<3x32xf32>
    %5 = tpu.concatenate %4, %3, %4 in 0 : vector<3x32xf32>, vector<64x32xf32>, vector<3x32xf32> -> vector<70x32xf32>
    %6 = vector.extract_strided_slice %5 {offsets = [0, 0], sizes = [64, 32], strides = [1, 1]} : vector<70x32xf32> to vector<64x32xf32>
    %7 = vector.extract_strided_slice %5 {offsets = [1, 0], sizes = [64, 32], strides = [1, 1]} : vector<70x32xf32> to vector<64x32xf32>
    %8 = vector.extract_strided_slice %5 {offsets = [2, 0], sizes = [64, 32], strides = [1, 1]} : vector<70x32xf32> to vector<64x32xf32>
    %9 = vector.extract_strided_slice %5 {offsets = [3, 0], sizes = [64, 32], strides = [1, 1]} : vector<70x32xf32> to vector<64x32xf32>
    %10 = vector.extract_strided_slice %5 {offsets = [4, 0], sizes = [64, 32], strides = [1, 1]} : vector<70x32xf32> to vector<64x32xf32>
    %11 = vector.extract_strided_slice %5 {offsets = [5, 0], sizes = [64, 32], strides = [1, 1]} : vector<70x32xf32> to vector<64x32xf32>
    %12 = vector.extract_strided_slice %5 {offsets = [6, 0], sizes = [64, 32], strides = [1, 1]} : vector<70x32xf32> to vector<64x32xf32>
    %13 = tpu.concatenate %6, %7, %8, %9, %10, %11, %12 in 1 : vector<64x32xf32>, vector<64x32xf32>, vector<64x32xf32>, vector<64x32xf32>, vector<64x32xf32>, vector<64x32xf32>, vector<64x32xf32> -> vector<64x224xf32>
    %c0_5 = arith.constant 0 : index
    %c0_6 = arith.constant 0 : index
    %14 = vector.load %arg3[%c0_5, %c0_6] : memref<224x96xf32, #tpu.memory_space<vmem>>, vector<224x96xf32>
    %cst_7 = arith.constant dense<0.000000e+00> : vector<64x96xf32>
    %15 = tpu.matmul %13, %14, %cst_7 {dimension_numbers = #tpu.dot_dimension_numbers<[1], [0], [0], [1], [0, 0, 1, 1], [], []>} : vector<64x224xf32>, vector<224x96xf32>, vector<64x96xf32> -> vector<64x96xf32>
    %cst_8 = arith.constant 0xFF800000 : f32
    %16 = vector.broadcast %cst_8 : f32 to vector<1x128xf32>
    %17 = tpu.concatenate %16, %1, %16 in 0 : vector<1x128xf32>, vector<64x128xf32>, vector<1x128xf32> -> vector<66x128xf32>
    %18 = vector.extract_strided_slice %17 {offsets = [0, 0], sizes = [64, 128], strides = [1, 1]} : vector<66x128xf32> to vector<64x128xf32>
    %19 = vector.extract_strided_slice %17 {offsets = [1, 0], sizes = [64, 128], strides = [1, 1]} : vector<66x128xf32> to vector<64x128xf32>
    %20 = arith.maximumf %18, %19 : vector<64x128xf32>
    %21 = vector.extract_strided_slice %17 {offsets = [2, 0], sizes = [64, 128], strides = [1, 1]} : vector<66x128xf32> to vector<64x128xf32>
    %22 = arith.maximumf %20, %21 : vector<64x128xf32>
    %c0_9 = arith.constant 0 : index
    %c0_10 = arith.constant 0 : index
    %23 = vector.load %arg4[%c0_9, %c0_10] : memref<128x32xf32, #tpu.memory_space<vmem>>, vector<128x32xf32>
    %cst_11 = arith.constant dense<0.000000e+00> : vector<64x32xf32>
    %24 = tpu.matmul %22, %23, %cst_11 {dimension_numbers = #tpu.dot_dimension_numbers<[1], [0], [0], [1], [0, 0, 1, 1], [], []>} : vector<64x128xf32>, vector<128x32xf32>, vector<64x32xf32> -> vector<64x32xf32>
    %25 = tpu.concatenate %15, %24 in 1 : vector<64x96xf32>, vector<64x32xf32> -> vector<64x128xf32>
    %c0_12 = arith.constant 0 : index
    %c0_13 = arith.constant 0 : index
    %c0_14 = arith.constant 0 : index
    %26 = vector.load %arg5[%c0_12, %c0_13, %c0_14] : memref<1x64x128xf32, #tpu.memory_space<vmem>>, vector<1x64x128xf32>
    %27 = vector.shape_cast %26 : vector<1x64x128xf32> to vector<64x128xf32>
    %28 = vector.shape_cast %25 : vector<64x128xf32> to vector<1x64x128xf32>
    tpu.vector_store %arg5[%c0_12, %c0_13, %c0_14], %28 {strides = array<i32>} : memref<1x64x128xf32, #tpu.memory_space<vmem>>, vector<1x64x128xf32>,
    %cst_15 = arith.constant dense<0.000000e+00> : vector<128xf32>
    %29 = vector.multi_reduction <add>, %25, %cst_15 [0] : vector<64x128xf32> to vector<128xf32>
    %30 = vector.shape_cast %29 : vector<128xf32> to vector<1x128xf32>
    %31 = arith.mulf %25, %25 : vector<64x128xf32>
    %cst_16 = arith.constant dense<0.000000e+00> : vector<128xf32>
    %32 = vector.multi_reduction <add>, %31, %cst_16 [0] : vector<64x128xf32> to vector<128xf32>
    %33 = vector.shape_cast %32 : vector<128xf32> to vector<1x128xf32>
    %34 = tpu.concatenate %30, %33 in 0 : vector<1x128xf32>, vector<1x128xf32> -> vector<2x128xf32>
    %c0_i32 = arith.constant 0 : i32
    %35 = arith.cmpi eq, %arg0, %c0_i32 : i32
    %36 = arith.extui %35 : i1 to i32
    %c0_i32_17 = arith.constant 0 : i32
    %37 = arith.cmpi ne, %36, %c0_i32_17 : i32
    scf.if %37 {
      %cst_22 = arith.constant 0.000000e+00 : f32
      %41 = vector.broadcast %cst_22 : f32 to vector<2x128xf32>
      %c0_23 = arith.constant 0 : index
      %c0_24 = arith.constant 0 : index
      %42 = vector.load %arg6[%c0_23, %c0_24] : memref<2x128xf32, #tpu.memory_space<vmem>>, vector<2x128xf32>
      tpu.vector_store %arg6[%c0_23, %c0_24], %41 {strides = array<i32>} : memref<2x128xf32, #tpu.memory_space<vmem>>, vector<2x128xf32>,
    } else {
    }
    %c0_18 = arith.constant 0 : index
    %c0_19 = arith.constant 0 : index
    %38 = vector.load %arg6[%c0_18, %c0_19] : memref<2x128xf32, #tpu.memory_space<vmem>>, vector<2x128xf32>
    %39 = arith.addf %38, %34 : vector<2x128xf32>
    %c0_20 = arith.constant 0 : index
    %c0_21 = arith.constant 0 : index
    %40 = vector.load %arg6[%c0_20, %c0_21] : memref<2x128xf32, #tpu.memory_space<vmem>>, vector<2x128xf32>
    tpu.vector_store %arg6[%c0_20, %c0_21], %39 {strides = array<i32>} : memref<2x128xf32, #tpu.memory_space<vmem>>, vector<2x128xf32>,
    return
  }
  func.func @transform_0(%arg0: i32) -> (i32, i32, i32) {
    %c0_i32 = arith.constant 0 : i32
    %c0_i32_0 = arith.constant 0 : i32
    %c0_i32_1 = arith.constant 0 : i32
    return %arg0, %c0_i32, %c0_i32_0 : i32, i32, i32
  }
  func.func @transform_1(%arg0: i32) -> (i32, i32) {
    %c0_i32 = arith.constant 0 : i32
    %c0_i32_0 = arith.constant 0 : i32
    %c0_i32_1 = arith.constant 0 : i32
    return %c0_i32, %c0_i32_0 : i32, i32
  }
  func.func @transform_2(%arg0: i32) -> (i32, i32) {
    %c0_i32 = arith.constant 0 : i32
    %c0_i32_0 = arith.constant 0 : i32
    %c0_i32_1 = arith.constant 0 : i32
    return %c0_i32, %c0_i32_0 : i32, i32
  }
  func.func @transform_3(%arg0: i32) -> (i32, i32) {
    %c0_i32 = arith.constant 0 : i32
    %c0_i32_0 = arith.constant 0 : i32
    %c0_i32_1 = arith.constant 0 : i32
    return %c0_i32, %c0_i32_0 : i32, i32
  }
  func.func @transform_4(%arg0: i32) -> (i32, i32, i32) {
    %c0_i32 = arith.constant 0 : i32
    %c0_i32_0 = arith.constant 0 : i32
    %c0_i32_1 = arith.constant 0 : i32
    return %arg0, %c0_i32, %c0_i32_0 : i32, i32, i32
  }
  func.func @transform_5(%arg0: i32) -> (i32, i32) {
    %c0_i32 = arith.constant 0 : i32
    %c0_i32_0 = arith.constant 0 : i32
    %c0_i32_1 = arith.constant 0 : i32
    return %c0_i32, %c0_i32_0 : i32, i32
  }
}

module attributes {stable_mosaic.version = 11 : i64} {
  func.func @_scale_shift_add_relu_kernel(%arg0: i32, %arg1: memref<128x128xf32, #tpu.memory_space<vmem>>, %arg2: memref<128x128xf32, #tpu.memory_space<vmem>>, %arg3: memref<1x128xf32, #tpu.memory_space<vmem>>, %arg4: memref<1x128xf32, #tpu.memory_space<vmem>>, %arg5: memref<128x128xf32, #tpu.memory_space<vmem>>) attributes {dimension_semantics = [#tpu.dimension_semantics<parallel>], iteration_bounds = array<i64: 1>, scalar_prefetch = 0 : i64, scratch_operands = 0 : i64, tpu.core_type = #tpu.core_type<tc>, window_params = [{transform_indices = @transform_0, window_bounds = array<i64: 128, 128>}, {transform_indices = @transform_1, window_bounds = array<i64: 128, 128>}, {pipeline_mode = #tpu.pipeline_mode<synchronous>, transform_indices = @transform_2, window_bounds = array<i64: 1, 128>}, {pipeline_mode = #tpu.pipeline_mode<synchronous>, transform_indices = @transform_3, window_bounds = array<i64: 1, 128>}, {transform_indices = @transform_4, window_bounds = array<i64: 128, 128>}]} {
    %c0 = arith.constant 0 : index
    %c0_0 = arith.constant 0 : index
    %0 = vector.load %arg2[%c0, %c0_0] : memref<128x128xf32, #tpu.memory_space<vmem>>, vector<128x128xf32>
    %c0_1 = arith.constant 0 : index
    %c0_2 = arith.constant 0 : index
    %1 = vector.load %arg1[%c0_1, %c0_2] : memref<128x128xf32, #tpu.memory_space<vmem>>, vector<128x128xf32>
    %c0_3 = arith.constant 0 : index
    %c0_4 = arith.constant 0 : index
    %2 = vector.load %arg3[%c0_3, %c0_4] : memref<1x128xf32, #tpu.memory_space<vmem>>, vector<1x128xf32>
    %3 = vector.broadcast %2 : vector<1x128xf32> to vector<128x128xf32>
    %4 = arith.mulf %1, %3 : vector<128x128xf32>
    %5 = arith.addf %0, %4 : vector<128x128xf32>
    %c0_5 = arith.constant 0 : index
    %c0_6 = arith.constant 0 : index
    %6 = vector.load %arg4[%c0_5, %c0_6] : memref<1x128xf32, #tpu.memory_space<vmem>>, vector<1x128xf32>
    %7 = vector.broadcast %6 : vector<1x128xf32> to vector<128x128xf32>
    %8 = arith.addf %5, %7 : vector<128x128xf32>
    %cst = arith.constant 0.000000e+00 : f32
    %9 = vector.broadcast %cst : f32 to vector<128x128xf32>
    %10 = arith.maximumf %8, %9 : vector<128x128xf32>
    %c0_7 = arith.constant 0 : index
    %c0_8 = arith.constant 0 : index
    %11 = vector.load %arg5[%c0_7, %c0_8] : memref<128x128xf32, #tpu.memory_space<vmem>>, vector<128x128xf32>
    tpu.vector_store %arg5[%c0_7, %c0_8], %10 {strides = array<i32>} : memref<128x128xf32, #tpu.memory_space<vmem>>, vector<128x128xf32>,
    return
  }
  func.func @transform_0(%arg0: i32) -> (i32, i32) {
    %c0_i32 = arith.constant 0 : i32
    %c0_i32_0 = arith.constant 0 : i32
    return %arg0, %c0_i32 : i32, i32
  }
  func.func @transform_1(%arg0: i32) -> (i32, i32) {
    %c0_i32 = arith.constant 0 : i32
    %c0_i32_0 = arith.constant 0 : i32
    return %arg0, %c0_i32 : i32, i32
  }
  func.func @transform_2(%arg0: i32) -> (i32, i32) {
    %c0_i32 = arith.constant 0 : i32
    %c0_i32_0 = arith.constant 0 : i32
    %c0_i32_1 = arith.constant 0 : i32
    return %c0_i32, %c0_i32_0 : i32, i32
  }
  func.func @transform_3(%arg0: i32) -> (i32, i32) {
    %c0_i32 = arith.constant 0 : i32
    %c0_i32_0 = arith.constant 0 : i32
    %c0_i32_1 = arith.constant 0 : i32
    return %c0_i32, %c0_i32_0 : i32, i32
  }
  func.func @transform_4(%arg0: i32) -> (i32, i32) {
    %c0_i32 = arith.constant 0 : i32
    %c0_i32_0 = arith.constant 0 : i32
    return %arg0, %c0_i32 : i32, i32
  }
}

</mosaic_0001>

<bundles_post_ra>
// kernel: inception_backbone.9
= control target key start
LH: loop header
LB: loop body
LE: loop exit
PB: predicated region body
PF: predicated region fallthrough
CT: control target
= control target key end

     0   :  { %s248_s0 = inlined_call_operand.vmem [shape: f32[128,128], index: 0, kind: input, shape index: {}]   ;;  %s249_s1 = inlined_call_operand.vmem [shape: f32[1,128], index: 1, kind: input, shape index: {}]   ;;  %s250_s2 = inlined_call_operand.vmem [shape: f32[1,128], index: 2, kind: input, shape index: {}]   ;;  %s251_s3 = inlined_call_operand.vmem [shape: f32[128,128], index: 3, kind: output, shape index: {}]  }
   0x1   :  { %v14_v0 = vld [vmem:[%s248_s0] sm:$0xff]  ;;  %v15_v3 = vld [vmem:[%s248_s0 + $0x8] sm:$0xff]  ;;  %v16_v6 = vld [vmem:[%s248_s0 + $0x10] sm:$0xff] }
   0x2   :  { %v106_v1 = vld [vmem:[%s249_s1] ss:$0 sm:$0xff]  ;;  %v17_v7 = vld [vmem:[%s248_s0 + $0x18] sm:$0xff]  ;;  %v19_v12 = vld [vmem:[%s248_s0 + $0x28] sm:$0xff] }
   0x3   :  { %v137_v2 = vld [vmem:[%s250_s2] ss:$0 sm:$0xff]  ;;  %v34_v4 = vmul.f32 %v106_v1, %v14_v0  ;;  %v35_v5 = vmul.f32 %v106_v1, %v15_v3  ;;  %v36_v9 = vmul.f32 %v106_v1, %v16_v6  ;;  %v37_v10 = vmul.f32 %v106_v1, %v17_v7  ;;  %v20_v13 = vld [vmem:[%s248_s0 + $0x30] sm:$0xff]  ;;  %v21_v14 = vld [vmem:[%s248_s0 + $0x38] sm:$0xff] }
   0x4   :  { %v18_v8 = vld [vmem:[%s248_s0 + $0x20] sm:$0xff]  ;;  %v39_v17 = vmul.f32 %v106_v1, %v19_v12  ;;  %v40_v18 = vmul.f32 %v106_v1, %v20_v13  ;;  %v41_v22 = vmul.f32 %v106_v1, %v21_v14  ;;  %v23_v24 = vld [vmem:[%s248_s0 + $0x48] sm:$0xff]  ;;  %v24_v29 = vld [vmem:[%s248_s0 + $0x50] sm:$0xff] }
   0x5   :  { %v38_v11 = vmul.f32 %v106_v1, %v18_v8  ;;  %v54_v15 = vadd.f32 %v137_v2, %v34_v4  ;;  %v55_v16 = vadd.f32 %v137_v2, %v35_v5  ;;  %v56_v19 = vadd.f32 %v137_v2, %v36_v9  ;;  %v22_v23 = vld [vmem:[%s248_s0 + $0x40] sm:$0xff]  ;;  %v25_v30 = vld [vmem:[%s248_s0 + $0x58] sm:$0xff]  ;;  %v27_v35 = vld [vmem:[%s248_s0 + $0x68] sm:$0xff] }
   0x6   :  { %v57_v20 = vadd.f32 %v137_v2, %v37_v10  ;;  %v59_v27 = vadd.f32 %v137_v2, %v39_v17  ;;  %v60_v28 = vadd.f32 %v137_v2, %v40_v18  ;;  %v26_v31 = vld [vmem:[%s248_s0 + $0x60] sm:$0xff]  ;;  %v61_v34 = vadd.f32 %v137_v2, %v41_v22  ;;  %v28_v36 = vld [vmem:[%s248_s0 + $0x70] sm:$0xff]  ;;  %v29_v41 = vld [vmem:[%s248_s0 + $0x78] sm:$0xff] }
   0x7   :  { %v58_v21 = vadd.f32 %v137_v2, %v38_v11  ;;  %v70_v25 = vmax.f32 %v54_v15, 0.0  ;;  %v71_v26 = vmax.f32 %v55_v16, 0.0  ;;  %v72_v32 = vmax.f32 %v56_v19, 0.0 }
   0x8   :  { %v73_v33 = vmax.f32 %v57_v20, 0.0  ;;  %v75_v38 = vmax.f32 %v59_v27, 0.0  ;;  %v42_v39 = vmul.f32 %v106_v1, %v22_v23  ;;  %v43_v40 = vmul.f32 %v106_v1, %v23_v24 }
   0x9   :  { %86 = vst [vmem:[%s251_s3] sm:$0xff] %v70_v25  ;;  %v74_v37 = vmax.f32 %v58_v21, 0.0  ;;  %v76_v42 = vmax.f32 %v60_v28, 0.0  ;;  %v44_v43 = vmul.f32 %v106_v1, %v24_v29  ;;  %v45_v44 = vmul.f32 %v106_v1, %v25_v30 }
   0xa   :  { %87 = vst [vmem:[%s251_s3 + $0x8] sm:$0xff] %v71_v26  ;;  %v46_v45 = vmul.f32 %v106_v1, %v26_v31  ;;  %v62_v46 = vadd.f32 %v137_v2, %v42_v39  ;;  %v63_v47 = vadd.f32 %v137_v2, %v43_v40  ;;  %v47_v48 = vmul.f32 %v106_v1, %v27_v35 }
   0xb   :  { %88 = vst [vmem:[%s251_s3 + $0x10] sm:$0xff] %v72_v32  ;;  %v48_v49 = vmul.f32 %v106_v1, %v28_v36  ;;  %v77_v50 = vmax.f32 %v61_v34, 0.0  ;;  %v64_v51 = vadd.f32 %v137_v2, %v44_v43  ;;  %v65_v52 = vadd.f32 %v137_v2, %v45_v44 }
   0xc   :  { %89 = vst [vmem:[%s251_s3 + $0x18] sm:$0xff] %v73_v33  ;;  %v49_v53 = vmul.f32 %v106_v1, %v29_v41  ;;  %v78_v54 = vmax.f32 %v62_v46, 0.0  ;;  %v66_v55 = vadd.f32 %v137_v2, %v46_v45  ;;  %v79_v56 = vmax.f32 %v63_v47, 0.0 }
   0xd   :  { %90 = vst [vmem:[%s251_s3 + $0x20] sm:$0xff] %v74_v37  ;;  %v67_v57 = vadd.f32 %v137_v2, %v47_v48  ;;  %v80_v58 = vmax.f32 %v64_v51, 0.0  ;;  %v68_v59 = vadd.f32 %v137_v2, %v48_v49  ;;  %v81_v60 = vmax.f32 %v65_v52, 0.0 }
   0xe   :  { %91 = vst [vmem:[%s251_s3 + $0x28] sm:$0xff] %v75_v38  ;;  %v69_v61 = vadd.f32 %v137_v2, %v49_v53  ;;  %v82_v62 = vmax.f32 %v66_v55, 0.0 }
   0xf   :  { %92 = vst [vmem:[%s251_s3 + $0x30] sm:$0xff] %v76_v42  ;;  %v83_v63 = vmax.f32 %v67_v57, 0.0  ;;  %v84_v0 = vmax.f32 %v68_v59, 0.0 }
  0x10   :  { %93 = vst [vmem:[%s251_s3 + $0x38] sm:$0xff] %v77_v50  ;;  %v85_v1 = vmax.f32 %v69_v61, 0.0 }
  0x11   :  { %94 = vst [vmem:[%s251_s3 + $0x40] sm:$0xff] %v78_v54 }
  0x12   :  { %95 = vst [vmem:[%s251_s3 + $0x48] sm:$0xff] %v79_v56 }
  0x13   :  { %96 = vst [vmem:[%s251_s3 + $0x50] sm:$0xff] %v80_v58 }
  0x14   :  { %97 = vst [vmem:[%s251_s3 + $0x58] sm:$0xff] %v81_v60 }
  0x15   :  { %98 = vst [vmem:[%s251_s3 + $0x60] sm:$0xff] %v82_v62 }
  0x16   :  { %99 = vst [vmem:[%s251_s3 + $0x68] sm:$0xff] %v83_v63 }
  0x17   :  { %100 = vst [vmem:[%s251_s3 + $0x70] sm:$0xff] %v84_v0 }
  0x18   :  { %101 = vst [vmem:[%s251_s3 + $0x78] sm:$0xff] %v85_v1 }

// kernel: inception_backbone.14
= control target key start
LH: loop header
LB: loop body
LE: loop exit
PB: predicated region body
PF: predicated region fallthrough
CT: control target
= control target key end

     0   :  { %s425_s12 = smov 0   ;;  %s467_s0 = inlined_call_operand.vmem [shape: f32[2,64,4], index: 0, kind: input, shape index: {}]   ;;  %s468_s1 = inlined_call_operand.vmem [shape: f32[4,128], index: 1, kind: input, shape index: {}]   ;;  %s469_s2 = inlined_call_operand.vmem [shape: f32[2,64,128], index: 2, kind: output, shape index: {0}]   ;;  %s470_s3 = inlined_call_operand.vmem [shape: f32[2,128], index: 3, kind: output, shape index: {1}]  }
   0x1 LB: > { %s431_s13 = sadd.s32 4294967295, %s402_s12   ;;  %p365_p0 = scmp.ge.s32.totalorder %s402_s12, 1  ;;  %s402_s12 = sphi %s425_s12, %s14_s12  }
   0x2   : > { %p135_p1 = scmp.lt.s32.totalorder %s402_s12, 3 }
   0x4   : > { %p136_p2 = pnand %p365_p0, %p135_p1 }
   0x5   : > { %p159_p3 = scmp.lt.s32.totalorder (!%p136_p2), %s431_s13, 1  ;;  %p379_p4 = scmp.ne.s32.totalorder (!%p136_p2), %s431_s13, 0 }
   0x6   : > { %139 = sbr.rel (%p136_p2) target bundleno = 191 (0xbf), region = 28 }
   0xb   : > { %v177_v0 = vld [vmem:[%s468_s1] sm:$0xf]  ;;  %vm203_vm0 = vcmask 1043456   ;;  %s160_s16 = scalar_select %p159_p3, %s431_s13, 1  ;;  %vm178_vm1 = vcmask 31744   ;;  %vm290_vm2 = vcmask 1040384  }
   0xc   : > { %370 = vmatpush.msk.msra.mxu0 %vm203_vm0, %v177_v0  ;;  %385 = vmatpush.msk.msra.mxu2 %vm203_vm0, %v177_v0 }
   0xd   : > { %384 = vmatpush.msk.msra.mxu1 %vm203_vm0, %v177_v0  ;;  %386 = vmatpush.msk.msra.mxu3 %vm203_vm0, %v177_v0  ;;  %s382_s17 = sshll.u32 %s160_s16, 6 }
   0xe   : > { %s163_s20 = scalar_lea.vmem %s467_s0, %s382_s17  ;;  %s168_s23 = scalar_lea.vmem %s469_s2, %s382_s17 }
   0xf   : > { %v169_v1 = vld [vmem:[%s163_s20] sm:$0xff]  ;;  %v171_v3 = vld [vmem:[%s163_s20 + $0x10] sm:$0xff]  ;;  %v170_v5 = vld [vmem:[%s163_s20 + $0x8] sm:$0xff] }
  0x10   : > { %v173_v2 = vld [vmem:[%s163_s20 + $0x20] sm:$0xff]  ;;  %371 = vmatmul.msk.f32.vlgmr.msra.gmra.mxu0 %vm178_vm1, %v169_v1  ;;  %v175_v4 = vld [vmem:[%s163_s20 + $0x30] sm:$0xff]  ;;  %373 = vmatmul.msk.f32.vlgmr.msra.gmra.mxu1 %vm178_vm1, %v171_v3  ;;  %v174_v6 = vld [vmem:[%s163_s20 + $0x28] sm:$0xff] }
  0x11   : > { %375 = vmatmul.msk.f32.vlgmr.msra.gmra.mxu2 %vm178_vm1, %v173_v2  ;;  %377 = vmatmul.msk.f32.vlgmr.msra.gmra.mxu3 %vm178_vm1, %v175_v4  ;;  %v172_v7 = vld [vmem:[%s163_s20 + $0x18] sm:$0xff] }
  0x12   : > { %v176_v8 = vld [vmem:[%s163_s20 + $0x38] sm:$0xff] }
  0x18   : > { %372 = vmatmul.msk.f32.gmra.mxu0 %vm178_vm1, %v170_v5  ;;  %374 = vmatmul.msk.f32.gmra.mxu1 %vm178_vm1, %v172_v7 }
  0x19   : > { %376 = vmatmul.msk.f32.gmra.mxu2 %vm178_vm1, %v174_v6  ;;  %378 = vmatmul.msk.f32.gmra.mxu3 %vm178_vm1, %v176_v8 }
  0x8d   : > { %v224_v9 = vpop.f32.mrf.mxu0  ;;  %v230_v10 = vpop.f32.mrf.mxu1 }
  0x8e   : > { %248 = vst [vmem:[%s168_s23] sm:$0xff] %v224_v9  ;;  %v269_v14 = vmul.f32 %v224_v9, %v224_v9  ;;  %v271_v18 = vmul.f32 %v230_v10, %v230_v10 }
  0x8f   : > { %250 = vst [vmem:[%s168_s23 + $0x10] sm:$0xff] %v230_v10 }
  0x94   : > { %v236_v11 = vpop.f32.mrf.mxu2  ;;  %v242_v12 = vpop.f32.mrf.mxu3 }
  0x95   : > { %252 = vst [vmem:[%s168_s23 + $0x20] sm:$0xff] %v236_v11  ;;  %v227_v13 = vpop.f32.mrf.mxu0  ;;  %v233_v17 = vpop.f32.mrf.mxu1  ;;  %v273_v25 = vmul.f32 %v236_v11, %v236_v11  ;;  %v275_v32 = vmul.f32 %v242_v12, %v242_v12 }
  0x96   : > { %254 = vst [vmem:[%s168_s23 + $0x30] sm:$0xff] %v242_v12  ;;  %v256_v15 = vadd.f32 %v227_v13, %v224_v9  ;;  %v270_v16 = vmul.f32 %v227_v13, %v227_v13  ;;  %v272_v21 = vmul.f32 %v233_v17, %v233_v17 }
  0x97   : > { %249 = vst [vmem:[%s168_s23 + $0x8] sm:$0xff] %v227_v13 }
  0x98   : > { %251 = vst [vmem:[%s168_s23 + $0x18] sm:$0xff] %v233_v17  ;;  %v277_v19 = vadd.f32 %v270_v16, %v269_v14  ;;  %v257_v20 = vadd.f32 %v256_v15, %v230_v10 }
  0x9a   : > { %v258_v22 = vadd.f32 %v257_v20, %v233_v17  ;;  %v278_v23 = vadd.f32 %v277_v19, %v271_v18 }
  0x9c   : > { %v239_v24 = vpop.f32.mrf.mxu2  ;;  %v279_v26 = vadd.f32 %v278_v23, %v272_v21  ;;  %v259_v27 = vadd.f32 %v258_v22, %v236_v11  ;;  %v245_v29 = vpop.f32.mrf.mxu3 }
  0x9d   : > { %253 = vst [vmem:[%s168_s23 + $0x28] sm:$0xff] %v239_v24  ;;  %v274_v28 = vmul.f32 %v239_v24, %v239_v24  ;;  %v276_v35 = vmul.f32 %v245_v29, %v245_v29 }
  0x9e   : > { %255 = vst [vmem:[%s168_s23 + $0x38] sm:$0xff] %v245_v29  ;;  %v260_v30 = vadd.f32 %v259_v27, %v239_v24  ;;  %v280_v31 = vadd.f32 %v279_v26, %v273_v25 }
  0xa0   : > { %v281_v33 = vadd.f32 %v280_v31, %v274_v28  ;;  %v261_v34 = vadd.f32 %v260_v30, %v242_v12 }
  0xa2   : > { %v262_v36 = vadd.f32 %v261_v34, %v245_v29  ;;  %v282_v37 = vadd.f32 %v281_v33, %v275_v32 }
  0xa4   : > { %v263_v38 = vrot.slane %v262_v36, 4  ;;  %v283_v39 = vadd.f32 %v282_v37, %v276_v35 }
  0xa6   : > { %v264_v40 = vadd.f32 %v263_v38, %v262_v36  ;;  %v284_v41 = vrot.slane %v283_v39, 4 }
  0xa8   : > { %v265_v42 = vrot.slane %v264_v40, 2  ;;  %v285_v43 = vadd.f32 %v284_v41, %v283_v39 }
  0xaa   : > { %v266_v44 = vadd.f32 %v265_v42, %v264_v40  ;;  %v286_v45 = vrot.slane %v285_v43, 2 }
  0xac   : > { %v267_v46 = vrot.slane %v266_v44, 1  ;;  %v287_v47 = vadd.f32 %v286_v45, %v285_v43 }
  0xae   : > { %v288_v48 = vrot.slane %v287_v47, 1  ;;  %v268_v49 = vadd.f32 %v267_v46, %v266_v44  ;;  %295 = sbr.rel (%p379_p4) target bundleno = 181 (0xb5), region = 32 }
  0xb0   : > { %v289_v50 = vadd.f32 %v288_v48, %v287_v47 }
  0xb2   : > { %v291_v51 = vsel %vm290_vm2, %v268_v49, %v289_v50 }
  0xb3   : > { %v404_v52 = vmov 0.0  }
  0xb4   : > { %296 = vst [vmem:[%s470_s3] sm:$0x3] %v404_v52 }
  0xb5 PF:  {}
  0xbb   : > { %v297_v53 = vld [vmem:[%s470_s3] sm:$0x3] }
  0xbc   : > { %v298_v54 = vadd.f32 %v297_v53, %v291_v51 }
  0xbe   : > { %299 = vst [vmem:[%s470_s3] sm:$0x3] %v298_v54 }
  0xbf PF: > { %s14_s12 = sadd.s32 1, %s402_s12  }
  0xc0   : > { %p11_p5 = scmp.ge.s32.totalorder %s14_s12, 4  }
  0xc2   :  { %13 = sbr.rel (!%p11_p5) target bundleno = 1 (0x1), region = 70 }

// kernel: inception_backbone.8
= control target key start
LH: loop header
LB: loop body
LE: loop exit
PB: predicated region body
PF: predicated region fallthrough
CT: control target
= control target key end

     0   :  { %s1221_s18 = smov 0   ;;  %s1696_s0 = inlined_call_operand.vmem [shape: f32[2,64,4], index: 0, kind: input, shape index: {}]   ;;  %s1697_s1 = inlined_call_operand.vmem [shape: f32[4,32], index: 1, kind: input, shape index: {}]   ;;  %s1698_s2 = inlined_call_operand.vmem [shape: f32[224,96], index: 2, kind: input, shape index: {}]   ;;  %s1699_s3 = inlined_call_operand.vmem [shape: f32[4,32], index: 3, kind: input, shape index: {}]   ;;  %s1700_s4 = inlined_call_operand.vmem [shape: f32[2,64,128], index: 4, kind: output, shape index: {0}]   ;;  %s1701_s5 = inlined_call_operand.vmem [shape: f32[2,128], index: 5, kind: output, shape index: {1}]  }
   0x1 LB: > { %s1227_s19 = sadd.s32 4294967295, %s1185_s18   ;;  %p1070_p0 = scmp.ge.s32.totalorder %s1185_s18, 1  ;;  %s1185_s18 = sphi %s1221_s18, %s16_s18  }
   0x2   : > { %p185_p1 = scmp.lt.s32.totalorder %s1185_s18, 3 }
   0x4   : > { %p186_p2 = pnand %p1070_p0, %p185_p1 }
   0x5   : > { %p213_p3 = scmp.lt.s32.totalorder (!%p186_p2), %s1227_s19, 1  ;;  %s1187_s29 = smov (!%p186_p2), 32  }
   0x6   : > { %189 = sbr.rel (%p186_p2) target bundleno = 520 (0x208), region = 36  ;;  %s1188_s30 = smov (!%p186_p2), 64  }
   0x7   : > { %s1189_s6 = smov (!%p186_p2), 96   ;;  %p1101_p4 = scmp.ne.s32.totalorder (!%p186_p2), %s1227_s19, 0 }
   0xb   : > { %v231_v0 = vld [vmem:[%s1697_s1] sm:$0xf]  ;;  %vm257_vm0 = vcmask 1043456   ;;  %s1237_s22 = scalar_select %p213_p3, %s1227_s19, 1  ;;  %vm232_vm1 = vcmask 31744   ;;  %vm750_vm2 = vcmask 1040384  }
   0xc   : > { %1075 = vmatpush.msk.msra.mxu0 %vm257_vm0, %v231_v0  ;;  %vm339_vm3 = vcmask 1046528   ;;  %vm381_vm4 = vcmask 1045504   ;;  %v845_v32 = vld [vmem:[%s1699_s3] sm:$0xf]  ;;  %vm310_vm5 = vcmask 1042432   ;;  %vm531_vm6 = vcmask 1041408  }
   0xd   : > { %s1104_s23 = sshll.u32 %s1237_s22, 6  ;;  %1092 = vmatpush.msk.msra.mxu3 %vm257_vm0, %v845_v32  ;;  %vm423_vm7 = vcmask 1044480   ;;  %vm573_vm8 = vcmask 261120   ;;  %vm591_vm9 = vcmask 785408   ;;  %vm582_vm10 = vcmask 523264  }
   0xe   : > { %s217_s26 = scalar_lea.vmem %s1696_s0, %s1104_s23  ;;  %s1664_s7 = scalar_lea.vmem %s1700_s4, %s1104_s23 }
   0xf   : > { %v223_v1 = vld [vmem:[%s217_s26] sm:$0xff]  ;;  %v224_v2 = vld [vmem:[%s217_s26 + $0x8] sm:$0xff]  ;;  %v225_v3 = vld [vmem:[%s217_s26 + $0x10] sm:$0xff] }
  0x10   : > { %1076 = vmatmul.msk.f32.vlgmr.msra.gmra.mxu0 %vm232_vm1, %v223_v1  ;;  %v751_v4 = vrot.slane %v223_v1, 7  ;;  %v752_v5 = vrot.slane %v224_v2, 7  ;;  %v754_v6 = vrot.slane %v225_v3, 7  ;;  %v226_v7 = vld [vmem:[%s217_s26 + $0x18] sm:$0xff]  ;;  %v227_v8 = vld [vmem:[%s217_s26 + $0x20] sm:$0xff]  ;;  %v228_v15 = vld [vmem:[%s217_s26 + $0x28] sm:$0xff] }
  0x11   : > { %v756_v9 = vrot.slane %v226_v7, 7  ;;  %v758_v10 = vrot.slane %v227_v8, 7  ;;  %v760_v16 = vrot.slane %v228_v15, 7  ;;  %v229_v18 = vld [vmem:[%s217_s26 + $0x30] sm:$0xff]  ;;  %v1262_v21 = vld [vmem:[%s217_s26 + $0x38] sm:$0xff] }
  0x12   : > { %v753_v11 = vsel %vm750_vm2, %v751_v4, %v752_v5  ;;  %v755_v12 = vsel %vm750_vm2, %v752_v5, %v754_v6  ;;  %v762_v19 = vrot.slane %v229_v18, 7  ;;  %v764_v22 = vrot.slane %v1262_v21, 7 }
  0x13   : > { %v1249_v13 = vsel %vm750_vm2, %v754_v6, %v756_v9  ;;  %v1252_v14 = vsel %vm750_vm2, %v756_v9, %v758_v10  ;;  %v1256_v17 = vsel %vm750_vm2, %v758_v10, %v760_v16  ;;  %v775_v24 = vsel %vm750_vm2, -inf, %v751_v4 }
  0x14   : > { %v1260_v20 = vsel %vm750_vm2, %v760_v16, %v762_v19  ;;  %v1269_v23 = vsel %vm750_vm2, %v762_v19, %v764_v22  ;;  %v779_v25 = vrot.slane %v775_v24, 1  ;;  %v780_v26 = vrot.slane %v753_v11, 1 }
  0x15   : > { %v812_v27 = vrot.slane %v775_v24, 2  ;;  %v813_v29 = vrot.slane %v753_v11, 2  ;;  %v782_v34 = vrot.slane %v755_v12, 1  ;;  %v815_v36 = vrot.slane %v755_v12, 2 }
  0x16   : > { %v781_v28 = vsel %vm339_vm3, %v779_v25, %v780_v26  ;;  %v784_v41 = vrot.slane %v1249_v13, 1  ;;  %v817_v44 = vrot.slane %v1249_v13, 2  ;;  %v786_v54 = vrot.slane %v1252_v14, 1 }
  0x17   : > { %v804_v30 = vmax.f32 %v775_v24, %v781_v28  ;;  %v814_v31 = vsel %vm381_vm4, %v812_v27, %v813_v29  ;;  %v783_v35 = vsel %vm339_vm3, %v780_v26, %v782_v34  ;;  %v816_v38 = vsel %vm381_vm4, %v813_v29, %v815_v36 }
  0x18   : > { %1077 = vmatmul.msk.f32.gmra.mxu0 %vm232_vm1, %v224_v2  ;;  %v805_v37 = vmax.f32 %v753_v11, %v783_v35  ;;  %v785_v43 = vsel %vm339_vm3, %v782_v34, %v784_v41  ;;  %v818_v46 = vsel %vm381_vm4, %v815_v36, %v817_v44  ;;  %v787_v58 = vsel %vm339_vm3, %v784_v41, %v786_v54 }
  0x19   : > { %v837_v33 = vmax.f32 %v804_v30, %v814_v31  ;;  %v806_v45 = vmax.f32 %v755_v12, %v785_v43  ;;  %v819_v59 = vrot.slane %v1252_v14, 2  ;;  %v807_v61 = vmax.f32 %v1249_v13, %v787_v58 }
  0x1a   : > { %v838_v40 = vmax.f32 %v805_v37, %v816_v38  ;;  %v790_v31 = vrot.slane %v1260_v20, 1 }
  0x1b   : > { %1093 = vmatmul.msk.f32.vlgmr.msra.gmra.mxu3 %vm232_vm1, %v837_v33  ;;  %v839_v48 = vmax.f32 %v806_v45, %v818_v46  ;;  %v820_v63 = vsel %vm381_vm4, %v817_v44, %v819_v59  ;;  %v823_v45 = vrot.slane %v1260_v20, 2 }
  0x1c   : > { %v840_v2 = vmax.f32 %v807_v61, %v820_v63 }
  0x20   : > { %1078 = vmatmul.msk.f32.gmra.mxu0 %vm232_vm1, %v225_v3 }
  0x23   : > { %1094 = vmatmul.msk.f32.gmra.mxu3 %vm232_vm1, %v838_v40 }
  0x28   : > { %1079 = vmatmul.msk.f32.gmra.mxu0 %vm232_vm1, %v226_v7 }
  0x2b   : > { %1095 = vmatmul.msk.f32.gmra.mxu3 %vm232_vm1, %v839_v48 }
  0x30   : > { %1080 = vmatmul.msk.f32.gmra.mxu0 %vm232_vm1, %v227_v8  ;;  %v788_v8 = vrot.slane %v1256_v17, 1 }
  0x32   : > { %v789_v13 = vsel %vm339_vm3, %v786_v54, %v788_v8  ;;  %v791_v44 = vsel %vm339_vm3, %v788_v8, %v790_v31 }
  0x33   : > { %1096 = vmatmul.msk.f32.gmra.mxu3 %vm232_vm1, %v840_v2 }
  0x38   : > { %1081 = vmatmul.msk.f32.gmra.mxu0 %vm232_vm1, %v228_v15  ;;  %v821_v15 = vrot.slane %v1256_v17, 2 }
  0x3a   : > { %v822_v26 = vsel %vm381_vm4, %v819_v59, %v821_v15 }
  0x40   : > { %1082 = vmatmul.msk.f32.gmra.mxu0 %vm232_vm1, %v229_v18  ;;  %v808_v18 = vmax.f32 %v1252_v14, %v789_v13 }
  0x42   : > { %v841_v28 = vmax.f32 %v808_v18, %v822_v26 }
  0x44   : > { %1097 = vmatmul.msk.f32.gmra.mxu3 %vm232_vm1, %v841_v28 }
  0x48   : > { %1083 = vmatmul.msk.f32.gmra.mxu0 %vm232_vm1, %v1262_v21 }
  0x8d   : > { %v278_v39 = vpop.f32.mrf.mxu0 }
  0x8e   : > { %v311_v42 = vrot.slane %v278_v39, 5 }
  0x90   : > { %v1292_v49 = vsel %vm310_vm5, 0.0, %v311_v42 }
  0x91   : > { %v490_v52 = vrot.slane %v1292_v49, 5  ;;  %v532_v0 = vrot.slane %v1292_v49, 6 }
  0x95   : > { %v281_v47 = vpop.f32.mrf.mxu0 }
  0x96   : > { %v312_v50 = vrot.slane %v281_v47, 5  ;;  %v809_v47 = vmax.f32 %v1256_v17, %v791_v44 }
  0x98   : > { %v1296_v51 = vsel %vm310_vm5, %v311_v42, %v312_v50 }
  0x99   : > { %v491_v53 = vrot.slane %v1296_v51, 5  ;;  %v533_v60 = vrot.slane %v1296_v51, 6 }
  0x9b   : > { %v492_v55 = vsel %vm310_vm5, %v490_v52, %v491_v53  ;;  %v534_v3 = vsel %vm531_vm6, %v532_v0, %v533_v60  ;;  %v824_v52 = vsel %vm381_vm4, %v821_v15, %v823_v45 }
  0x9c   : > { %507 = vrot.lane.b32.xlu0 %v492_v55, %s1187_s29 }
  0x9d   : > { %v284_v56 = vpop.f32.mrf.mxu0 }
  0x9e   : > { %v314_v57 = vrot.slane %v284_v56, 5 }
  0xa0   : > { %v1308_v62 = vsel %vm310_vm5, %v312_v50, %v314_v57 }
  0xa1   : > { %v493_v1 = vrot.slane %v1308_v62, 5  ;;  %v535_v7 = vrot.slane %v1308_v62, 6  ;;  %v385_v30 = vrot.slane %v1308_v62, 2  ;;  %v343_v14 = vrot.slane %v1308_v62, 1 }
  0xa2   : > { %v427_v48 = vrot.slane %v1308_v62, 3 }
  0xa3   : > { %v494_v4 = vsel %vm310_vm5, %v491_v53, %v493_v1  ;;  %v536_v11 = vsel %vm531_vm6, %v533_v60, %v535_v7  ;;  %v842_v53 = vmax.f32 %v809_v47, %v824_v52 }
  0xa4   : > { %549 = vrot.lane.b32.xlu0 %v534_v3, %s1188_s30  ;;  %509 = vrot.lane.b32.xlu1 %v494_v4, %s1187_s29  ;;  %v341_v3 = vrot.slane %v1296_v51, 1 }
  0xa5   : > { %v287_v5 = vpop.f32.mrf.mxu0  ;;  %1098 = vmatmul.msk.f32.gmra.mxu3 %vm232_vm1, %v842_v53 }
  0xa6   : > { %v316_v6 = vrot.slane %v287_v5, 5 }
  0xa8   : > { %v1321_v9 = vsel %vm310_vm5, %v314_v57, %v316_v6  ;;  %v792_v57 = vrot.slane %v1269_v23, 1 }
  0xa9   : > { %v495_v10 = vrot.slane %v1321_v9, 5  ;;  %v537_v24 = vrot.slane %v1321_v9, 6  ;;  %v387_v25 = vrot.slane %v1321_v9, 2  ;;  %v345_v27 = vrot.slane %v1321_v9, 1 }
  0xaa   : > { %v429_v43 = vrot.slane %v1321_v9, 3  ;;  %v793_v0 = vsel %vm339_vm3, %v790_v31, %v792_v57  ;;  %v425_v31 = vrot.slane %v1296_v51, 3 }
  0xab   : > { %v496_v12 = vsel %vm310_vm5, %v493_v1, %v495_v10  ;;  %v538_v34 = vsel %vm531_vm6, %v535_v7, %v537_v24  ;;  %v388_v35 = vsel %vm381_vm4, %v385_v30, %v387_v25  ;;  %v346_v37 = vsel %vm339_vm3, %v343_v14, %v345_v27 }
  0xac   : > { %551 = vrot.lane.b32.xlu1 %v536_v11, %s1188_s30  ;;  %511 = vrot.lane.b32.xlu2 %v496_v12, %s1187_s29  ;;  %v430_v54 = vsel %vm423_vm7, %v427_v48, %v429_v43  ;;  %v825_v1 = vrot.slane %v1269_v23, 2  ;;  %v810_v4 = vmax.f32 %v1260_v20, %v793_v0  ;;  %v340_v7 = vrot.slane %v1292_v49, 1 }
  0xad   : > { %v290_v16 = vpop.f32.mrf.mxu0 }
  0xae   : > { %v318_v19 = vrot.slane %v290_v16, 5  ;;  %v826_v5 = vsel %vm381_vm4, %v823_v45, %v825_v1  ;;  %v342_v13 = vsel %vm339_vm3, %v340_v7, %v341_v3 }
  0xaf   : > { %v843_v11 = vmax.f32 %v810_v4, %v826_v5 }
  0xb0   : > { %v1336_v29 = vsel %vm310_vm5, %v316_v6, %v318_v19 }
  0xb1   : > { %v389_v32 = vrot.slane %v1336_v29, 2  ;;  %v347_v33 = vrot.slane %v1336_v29, 1  ;;  %v431_v39 = vrot.slane %v1336_v29, 3  ;;  %v539_v55 = vrot.slane %v1336_v29, 6  ;;  %1099 = vmatmul.msk.f32.gmra.mxu3 %vm232_vm1, %v843_v11 }
  0xb2   : > { %v497_v56 = vrot.slane %v1336_v29, 5 }
  0xb3   : > { %v390_v36 = vsel %vm381_vm4, %v387_v25, %v389_v32  ;;  %v348_v38 = vsel %vm339_vm3, %v345_v27, %v347_v33  ;;  %v432_v50 = vsel %vm423_vm7, %v429_v43, %v431_v39  ;;  %v540_v60 = vsel %vm531_vm6, %v537_v24, %v539_v55 }
  0xb4   : > { %553 = vrot.lane.b32.xlu2 %v538_v34, %s1188_s30  ;;  %v1139_v40 = vpack.i.bf16 %v390_v36, %v388_v35  ;;  %v1134_v41 = vpack.i.bf16 %v348_v38, %v346_v37  ;;  %v1144_v58 = vpack.i.bf16 %v432_v50, %v430_v54  ;;  %v498_v61 = vsel %vm310_vm5, %v495_v10, %v497_v56 }
  0xb5   : > { %v293_v42 = vpop.f32.mrf.mxu0  ;;  %v382_v27 = vrot.slane %v1292_v49, 2  ;;  %v424_v36 = vrot.slane %v1292_v49, 3 }
  0xb6   : > { %v320_v46 = vrot.slane %v293_v42, 5  ;;  %1140 = vrot.lane.b32.xlu1 %v1139_v40, %s1188_s30  ;;  %1135 = vrot.lane.b32.xlu0 %v1134_v41, %s1187_s29 }
  0xb7   : > { %v426_v42 = vsel %vm423_vm7, %v424_v36, %v425_v31  ;;  %v635_v36 = vld [vmem:[%s1698_s2 + $0x98] sm:$0xff] }
  0xb8   : > { %v1375_v17 = vsel %vm310_vm5, %v318_v19, %v320_v46  ;;  %v383_v19 = vrot.slane %v1296_v51, 2 }
  0xb9   : > { %v349_v63 = vrot.slane %v1375_v17, 1  ;;  %v499_v2 = vrot.slane %v1375_v17, 5  ;;  %v541_v6 = vrot.slane %v1375_v17, 6  ;;  %v391_v15 = vrot.slane %v1375_v17, 2 }
  0xba   : > { %v433_v24 = vrot.slane %v1375_v17, 3  ;;  %v384_v35 = vsel %vm381_vm4, %v382_v27, %v383_v19  ;;  %v386_v54 = vsel %vm381_vm4, %v383_v19, %v385_v30  ;;  %v642_v30 = vld [vmem:[%s1698_s2 + $0xd0] sm:$0xff] }
  0xbb   : > { %v350_v8 = vsel %vm339_vm3, %v347_v33, %v349_v63  ;;  %v500_v12 = vsel %vm310_vm5, %v497_v56, %v499_v2  ;;  %v542_v18 = vsel %vm531_vm6, %v539_v55, %v541_v6  ;;  %v392_v28 = vsel %vm381_vm4, %v389_v32, %v391_v15 }
  0xbc   : > { %1145 = vrot.lane.b32.xlu2 %v1144_v58, %s1189_s6  ;;  %v1149_v20 = vpack.i.bf16 %v342_v13, %v350_v8  ;;  %v434_v37 = vsel %vm423_vm7, %v431_v39, %v433_v24  ;;  %v1154_v40 = vpack.i.bf16 %v384_v35, %v392_v28  ;;  %v344_v55 = vsel %vm339_vm3, %v341_v3, %v343_v14  ;;  %v631_v28 = vld [vmem:[%s1698_s2 + $0x78] sm:$0xff]  ;;  %v630_v35 = vld [vmem:[%s1698_s2 + $0x70] sm:$0xff] }
  0xbd   : > { %v296_v59 = vpop.f32.mrf.mxu0  ;;  %v1159_v43 = vpack.i.bf16 %v426_v42, %v434_v37  ;;  %1106 = vmatpush.msra.mxu1 %v631_v28  ;;  %668 = vmatpush.msrb.mxu0 %v631_v28  ;;  %v633_v42 = vld [vmem:[%s1698_s2 + $0x88] sm:$0xff] }
  0xbe   : > { %555 = vrot.lane.b32.xlu1 %v540_v60, %s1188_s30  ;;  %513 = vrot.lane.b32.xlu0 %v498_v61, %s1187_s29  ;;  %v322_v10 = vrot.slane %v296_v59, 5  ;;  %v643_v60 = vld [vmem:[%s1698_s2 + $0xd8] sm:$0xff]  ;;  %v641_v61 = vld [vmem:[%s1698_s2 + $0xc8] sm:$0xff] }
  0xbf   : > { %713 = vmatpush.msra.mxu2 %v643_v60  ;;  %1107 = vmatpush.msra.mxu1 %v630_v35 }
  0xc0   : > { %v1406_v25 = vsel %vm310_vm5, %v320_v46, %v322_v10  ;;  %669 = vmatpush.msrb.mxu0 %v630_v35 }
  0xc1   : > { %v501_v38 = vrot.slane %v1406_v25, 5  ;;  %v393_v46 = vrot.slane %v1406_v25, 2  ;;  %v351_v39 = vrot.slane %v1406_v25, 1  ;;  %v543_v47 = vrot.slane %v1406_v25, 6  ;;  %714 = vmatpush.msra.mxu2 %v642_v30  ;;  %v616_v30 = vld [vmem:[%s1698_s2] sm:$0xff] }
  0xc2   : > { %v435_v56 = vrot.slane %v1406_v25, 3 }
  0xc3   : > { %v502_v45 = vsel %vm310_vm5, %v499_v2, %v501_v38  ;;  %v394_v50 = vsel %vm381_vm4, %v391_v15, %v393_v46  ;;  %v352_v52 = vsel %vm339_vm3, %v349_v63, %v351_v39  ;;  %v544_v53 = vsel %vm531_vm6, %v541_v6, %v543_v47  ;;  %715 = vmatpush.msra.mxu2 %v641_v61  ;;  %v639_v15 = vld [vmem:[%s1698_s2 + $0xb8] sm:$0xff] }
  0xc4   : > { %515 = vrot.lane.b32.xlu2 %v500_v12, %s1187_s29  ;;  %v1169_v58 = vpack.i.bf16 %v386_v54, %v394_v50  ;;  %v1164_v59 = vpack.i.bf16 %v344_v55, %v352_v52  ;;  %v436_v14 = vsel %vm423_vm7, %v433_v24, %v435_v56  ;;  %v428_v63 = vsel %vm423_vm7, %v425_v31, %v427_v48  ;;  %v638_v24 = vld [vmem:[%s1698_s2 + $0xb0] sm:$0xff]  ;;  %v636_v31 = vld [vmem:[%s1698_s2 + $0xa0] sm:$0xff]  ;;  %v623_v50 = vld [vmem:[%s1698_s2 + $0x38] sm:$0xff] }
  0xc5   : > { %v299_v16 = vpop.f32.mrf.mxu0  ;;  %v1174_v2 = vpack.i.bf16 %v428_v63, %v436_v14  ;;  %v776_v48 = vsel %vm750_vm2, %v764_v22, -inf  ;;  %v640_v22 = vld [vmem:[%s1698_s2 + $0xc0] sm:$0xff]  ;;  %v622_v52 = vld [vmem:[%s1698_s2 + $0x30] sm:$0xff]  ;;  %v619_v55 = vld [vmem:[%s1698_s2 + $0x18] sm:$0xff]  ;;  %v466_v61 = vrot.slane %v1296_v51, 4 }
  0xc6   : > { %v324_v26 = vrot.slane %v299_v16, 5  ;;  %557 = vrot.lane.b32.xlu0 %v542_v18, %s1188_s30  ;;  %1150 = vrot.lane.b32.xlu1 %v1149_v20, %s1187_s29  ;;  %v794_v8 = vrot.slane %v776_v48, 1  ;;  %v620_v54 = vld [vmem:[%s1698_s2 + $0x20] sm:$0xff] }
  0xc7   : > { %716 = vmatpush.msra.mxu2 %v640_v22  ;;  %v470_v22 = vrot.slane %v1321_v9, 4 }
  0xc8   : > { %v1416_v33 = vsel %vm310_vm5, %v322_v10, %v324_v26  ;;  %v1419_v34 = vsel %vm310_vm5, %v324_v26, 0.0  ;;  %v827_v10 = vrot.slane %v776_v48, 2  ;;  %v795_v20 = vsel %vm339_vm3, %v792_v57, %v794_v8  ;;  %v637_v57 = vld [vmem:[%s1698_s2 + $0xa8] sm:$0xff] }
  0xc9   : > { %v545_v32 = vrot.slane %v1416_v33, 6  ;;  %v547_v41 = vrot.slane %v1419_v34, 6  ;;  %v503_v0 = vrot.slane %v1416_v33, 5  ;;  %v353_v5 = vrot.slane %v1416_v33, 1  ;;  %717 = vmatpush.msra.mxu2 %v639_v15 }
  0xca   : > { %v437_v6 = vrot.slane %v1416_v33, 3  ;;  %v395_v7 = vrot.slane %v1416_v33, 2  ;;  %v505_v21 = vrot.slane %v1419_v34, 5  ;;  %v828_v16 = vsel %vm381_vm4, %v825_v1, %v827_v10 }
  0xcb   : > { %v548_v44 = vsel %vm531_vm6, %v545_v32, %v547_v41  ;;  %v546_v3 = vsel %vm531_vm6, %v543_v47, %v545_v32  ;;  %v504_v4 = vsel %vm310_vm5, %v501_v38, %v503_v0  ;;  %v354_v11 = vsel %vm339_vm3, %v351_v39, %v353_v5  ;;  %718 = vmatpush.msra.mxu2 %v638_v24  ;;  %v629_v38 = vld [vmem:[%s1698_s2 + $0x68] sm:$0xff]  ;;  %v628_v41 = vld [vmem:[%s1698_s2 + $0x60] sm:$0xff] }
  0xcc   : > { %1155 = vrot.lane.b32.xlu2 %v1154_v40, %s1188_s30  ;;  %v438_v12 = vsel %vm423_vm7, %v435_v56, %v437_v6  ;;  %v396_v13 = vsel %vm381_vm4, %v393_v46, %v395_v7  ;;  %v811_v18 = vmax.f32 %v1269_v23, %v795_v20  ;;  %v355_v19 = vrot.slane %v1419_v34, 1  ;;  %v634_v40 = vld [vmem:[%s1698_s2 + $0x90] sm:$0xff]  ;;  %1108 = vmatpush.msra.mxu1 %v629_v38  ;;  %v625_v39 = vld [vmem:[%s1698_s2 + $0x48] sm:$0xff]  ;;  %v624_v47 = vld [vmem:[%s1698_s2 + $0x40] sm:$0xff] }
  0xcd   : > { %v506_v27 = vsel %vm310_vm5, %v503_v0, %v505_v21  ;;  %v397_v23 = vrot.slane %v1419_v34, 2  ;;  %719 = vmatpush.msra.mxu2 %v637_v57  ;;  %v439_v37 = vrot.slane %v1419_v34, 3  ;;  %670 = vmatpush.msrb.mxu0 %v629_v38  ;;  %v626_v46 = vld [vmem:[%s1698_s2 + $0x50] sm:$0xff]  ;;  %v465_v0 = vrot.slane %v1292_v49, 4 }
  0xce   : > { %1160 = vrot.lane.b32.xlu0 %v1159_v43, %s1189_s6  ;;  %517 = vrot.lane.b32.xlu1 %v502_v45, %s1187_s29  ;;  %v844_v26 = vmax.f32 %v811_v18, %v828_v16  ;;  %v356_v1 = vsel %vm339_vm3, %v353_v5, %v355_v19  ;;  %v632_v45 = vld [vmem:[%s1698_s2 + $0x80] sm:$0xff]  ;;  %v618_v56 = vld [vmem:[%s1698_s2 + $0x10] sm:$0xff] }
  0xcf   : > { %720 = vmatpush.msra.mxu2 %v636_v31  ;;  %v398_v32 = vsel %vm381_vm4, %v395_v7, %v397_v23  ;;  %v440_v43 = vsel %vm423_vm7, %v437_v6, %v439_v37  ;;  %1109 = vmatpush.msra.mxu1 %v628_v41  ;;  %v468_v7 = vrot.slane %v1308_v62, 4  ;;  %v472_v31 = vrot.slane %v1336_v29, 4 }
  0xd0   : > { %1100 = vmatmul.msk.f32.gmra.mxu3 %vm232_vm1, %v844_v26  ;;  %671 = vmatpush.msrb.mxu0 %v628_v41 }
  0xd1   : > { %721 = vmatpush.msra.mxu2 %v635_v36  ;;  %v469_v10 = vsel %vm257_vm0, %v466_v61, %v468_v7  ;;  %v471_v15 = vsel %vm257_vm0, %v468_v7, %v470_v22 }
  0xd3   : > { %722 = vmatpush.msra.mxu2 %v634_v40 }
  0xd4   : > { %559 = vrot.lane.b32.xlu2 %v544_v53, %s1188_s30  ;;  %v621_v53 = vld [vmem:[%s1698_s2 + $0x28] sm:$0xff] }
  0xd5   : > { %723 = vmatpush.msra.mxu2 %v633_v42 }
  0xd6   : > { %1170 = vrot.lane.b32.xlu1 %v1169_v58, %s1188_s30  ;;  %1165 = vrot.lane.b32.xlu0 %v1164_v59, %s1187_s29  ;;  %v617_v58 = vld [vmem:[%s1698_s2 + $0x8] sm:$0xff]  ;;  %v890_v59 = vpop.f32.mrf.mxu3 }
  0xd7   : > { %724 = vmatpush.msra.mxu2 %v632_v45  ;;  %v474_v45 = vrot.slane %v1375_v17, 4 }
  0xdc   : > { %1175 = vrot.lane.b32.xlu2 %v1174_v2, %s1189_s6  ;;  %v467_v2 = vsel %vm257_vm0, %v465_v0, %v466_v61 }
  0xde   : > { %561 = vrot.lane.b32.xlu1 %v546_v3, %s1188_s30  ;;  %519 = vrot.lane.b32.xlu0 %v504_v4, %s1187_s29  ;;  %v893_v63 = vpop.f32.mrf.mxu3 }
  0xe4   : > { %369 = vrot.lane.b32.xlu2 %v354_v11, %s1187_s29 }
  0xe6   : > { %453 = vrot.lane.b32.xlu1 %v438_v12, %s1189_s6  ;;  %411 = vrot.lane.b32.xlu0 %v396_v13, %s1188_s30  ;;  %v896_v8 = vpop.f32.mrf.mxu3 }
  0xec   : > { %521 = vrot.lane.b32.xlu2 %v506_v27, %s1187_s29 }
  0xee   : > { %563 = vrot.lane.b32.xlu0 %v548_v44, %s1188_s30  ;;  %371 = vrot.lane.b32.xlu1 %v356_v1, %s1187_s29  ;;  %v627_v44 = vld [vmem:[%s1698_s2 + $0x58] sm:$0xff]  ;;  %v899_v57 = vpop.f32.mrf.mxu3 }
  0xef   : > { %1110 = vmatpush.msra.mxu1 %v627_v44  ;;  %672 = vmatpush.msrb.mxu0 %v627_v44 }
  0xf1   : > { %1111 = vmatpush.msra.mxu1 %v626_v46  ;;  %673 = vmatpush.msrb.mxu0 %v626_v46 }
  0xf3   : > { %1112 = vmatpush.msra.mxu1 %v625_v39  ;;  %674 = vmatpush.msrb.mxu0 %v625_v39 }
  0xf4   : > { %413 = vrot.lane.b32.xlu2 %v398_v32, %s1188_s30  ;;  %v473_v32 = vsel %vm257_vm0, %v470_v22, %v472_v31 }
  0xf5   : > { %1113 = vmatpush.msra.mxu1 %v624_v47  ;;  %675 = vmatpush.msrb.mxu0 %v624_v47 }
  0xf6   : > { %455 = vrot.lane.b32.xlu0 %v440_v43, %s1189_s6  ;;  %922 = vrot.lane.b32.xlu1 %v890_v59, %s1189_s6  ;;  %v902_v39 = vpop.f32.mrf.mxu3 }
  0xf7   : > { %1114 = vmatpush.msra.mxu1 %v623_v50  ;;  %676 = vmatpush.msrb.mxu0 %v623_v50 }
  0xf9   : > { %1115 = vmatpush.msra.mxu1 %v622_v52  ;;  %677 = vmatpush.msrb.mxu0 %v622_v52 }
  0xfb   : > { %1116 = vmatpush.msra.mxu1 %v621_v53  ;;  %678 = vmatpush.msrb.mxu0 %v621_v53 }
  0xfc   : > { %924 = vrot.lane.b32.xlu2 %v893_v63, %s1189_s6 }
  0xfd   : > { %1117 = vmatpush.msra.mxu1 %v620_v54  ;;  %679 = vmatpush.msrb.mxu0 %v620_v54 }
  0xfe   : > { %926 = vrot.lane.b32.xlu0 %v896_v8, %s1189_s6  ;;  %928 = vrot.lane.b32.xlu1 %v899_v57, %s1189_s6 }
  0xff   : > { %1118 = vmatpush.msra.mxu1 %v619_v55  ;;  %680 = vmatpush.msrb.mxu0 %v619_v55 }
 0x101   : > { %1119 = vmatpush.msra.mxu1 %v618_v56  ;;  %681 = vmatpush.msrb.mxu0 %v618_v56 }
 0x103   : > { %1120 = vmatpush.msra.mxu1 %v617_v58  ;;  %682 = vmatpush.msrb.mxu0 %v617_v58  ;;  %v476_v58 = vrot.slane %v1406_v25, 4 }
 0x104   : > { %930 = vrot.lane.b32.xlu2 %v902_v39, %s1189_s6 }
 0x105   : > { %1121 = vmatpush.msra.mxu1 %v616_v30  ;;  %683 = vmatpush.msrb.mxu0 %v616_v30 }
 0x106   : > { %v512_v60 = vpop.permute.xlu2 %511 }
 0x107   : > { %v602_v20 = vsel %vm573_vm8, %v471_v15, %v512_v60 }
 0x10e   : > { %v508_v14 = vpop.permute.xlu0 %507  ;;  %v554_v3 = vpop.permute.xlu2 %553 }
 0x10f   : > { %v600_v4 = vsel %vm573_vm8, %v467_v2, %v508_v14  ;;  %v610_v16 = vsel %vm582_vm10, %v602_v20, %v554_v3  ;;  %v477_v3 = vsel %vm257_vm0, %v474_v45, %v476_v58 }
 0x116   : > { %v550_v5 = vpop.permute.xlu0 %549  ;;  %v510_v48 = vpop.permute.xlu1 %509 }
 0x117   : > { %v608_v6 = vsel %vm582_vm10, %v600_v4, %v550_v5  ;;  %v601_v11 = vsel %vm573_vm8, %v469_v10, %v510_v48  ;;  %v1146_v13 = vpop.permute.xlu2 %1145 }
 0x118   : > { %1084 = vmatmul.msk.f32.vlgmr.msra.gmra.mxu2 %vm591_vm9, %v608_v6  ;;  %v1147_v1 = vunpack.i.l.bf16 %v1146_v13  ;;  %v1148_v44 = vunpack.i.h.bf16 %v1146_v13 }
 0x11e   : > { %v552_v12 = vpop.permute.xlu1 %551 }
 0x11f   : > { %v609_v21 = vsel %vm582_vm10, %v601_v11, %v552_v12  ;;  %v516_v24 = vpop.permute.xlu2 %515 }
 0x120   : > { %1085 = vmatmul.msk.f32.gmra.mxu2 %vm591_vm9, %v609_v21 }
 0x127   : > { %v1156_v46 = vpop.permute.xlu2 %1155 }
 0x128   : > { %1086 = vmatmul.msk.f32.gmra.mxu2 %vm591_vm9, %v610_v16  ;;  %v1141_v18 = vpop.permute.xlu1 %1140  ;;  %v1136_v19 = vpop.permute.xlu0 %1135  ;;  %v1158_v61 = vunpack.i.h.bf16 %v1156_v46  ;;  %v1157_v63 = vunpack.i.l.bf16 %v1156_v46 }
 0x129   : > { %v1142_v26 = vunpack.i.l.bf16 %v1141_v18  ;;  %v1137_v27 = vunpack.i.l.bf16 %v1136_v19  ;;  %v1138_v23 = vunpack.i.h.bf16 %v1136_v19  ;;  %v1143_v37 = vunpack.i.h.bf16 %v1141_v18  ;;  %v905_v60 = vpop.f32.mrf.mxu3 }
 0x12a   : > { %932 = vrot.lane.b32.xlu0 %v905_v60, %s1189_s6 }
 0x12b   : > { %v576_v28 = vsel %vm573_vm8, %v1308_v62, %v1137_v27  ;;  %v577_v38 = vsel %vm573_vm8, %v1321_v9, %v1138_v23  ;;  %v475_v9 = vsel %vm257_vm0, %v472_v31, %v474_v45 }
 0x12c   : > { %v585_v35 = vsel %vm582_vm10, %v576_v28, %v1142_v26  ;;  %v586_v62 = vsel %vm582_vm10, %v577_v38, %v1143_v37  ;;  %v604_v50 = vsel %vm573_vm8, %v475_v9, %v516_v24  ;;  %v478_v26 = vrot.slane %v1416_v33, 4 }
 0x12d   : > { %v594_v36 = vsel %vm591_vm9, %v585_v35, %v1147_v1  ;;  %v595_v47 = vsel %vm591_vm9, %v586_v62, %v1148_v44 }
 0x12e   : > { %690 = vmatmul.f32.vlgmr.msra.gmra.mxu1 %v594_v36  ;;  %v479_v35 = vsel %vm257_vm0, %v476_v58, %v478_v26 }
 0x12f   : > { %v560_v59 = vpop.permute.xlu2 %559 }
 0x130   : > { %v556_v40 = vpop.permute.xlu1 %555  ;;  %v514_v41 = vpop.permute.xlu0 %513 }
 0x131   : > { %v603_v42 = vsel %vm573_vm8, %v473_v32, %v514_v41 }
 0x132   : > { %v611_v43 = vsel %vm582_vm10, %v603_v42, %v556_v40  ;;  %v480_v42 = vrot.slane %v1419_v34, 4 }
 0x133   : > { %1087 = vmatmul.msk.f32.gmra.mxu2 %vm591_vm9, %v611_v43 }
 0x134   : > { %v908_v11 = vpop.f32.mrf.mxu3  ;;  %v481_v62 = vsel %vm257_vm0, %v478_v26, %v480_v42 }
 0x135   : > { %934 = vrot.lane.b32.xlu1 %v908_v11, %s1189_s6 }
 0x136   : > { %693 = vmatmul.f32.gmra.mxu1 %v595_v47 }
 0x137   : > { %v1176_v10 = vpop.permute.xlu2 %1175 }
 0x138   : > { %v558_v52 = vpop.permute.xlu0 %557  ;;  %v1151_v53 = vpop.permute.xlu1 %1150  ;;  %v1178_v16 = vunpack.i.h.bf16 %v1176_v10  ;;  %v1177_v18 = vunpack.i.l.bf16 %v1176_v10 }
 0x139   : > { %v612_v54 = vsel %vm582_vm10, %v604_v50, %v558_v52  ;;  %v1153_v55 = vunpack.i.h.bf16 %v1151_v53  ;;  %v1152_v56 = vunpack.i.l.bf16 %v1151_v53 }
 0x13b   : > { %1088 = vmatmul.msk.f32.gmra.mxu2 %vm591_vm9, %v612_v54  ;;  %v574_v30 = vsel %vm573_vm8, %v1292_v49, %v1153_v55  ;;  %v578_v14 = vsel %vm573_vm8, %v1336_v29, %v1152_v56 }
 0x13c   : > { %v583_v7 = vsel %vm582_vm10, %v574_v30, %v1158_v61  ;;  %v587_v8 = vsel %vm582_vm10, %v578_v14, %v1157_v63 }
 0x13f   : > { %v370_v36 = vpop.permute.xlu2 %369 }
 0x140   : > { %v1161_v0 = vpop.permute.xlu0 %1160  ;;  %v518_v2 = vpop.permute.xlu1 %517  ;;  %v580_v37 = vsel %vm573_vm8, %v1406_v25, %v370_v36 }
 0x141   : > { %v1163_v4 = vunpack.i.h.bf16 %v1161_v0  ;;  %v1162_v5 = vunpack.i.l.bf16 %v1161_v0  ;;  %v605_v48 = vsel %vm573_vm8, %v477_v3, %v518_v2 }
 0x142   : > { %v613_v6 = vsel %vm582_vm10, %v605_v48, %v560_v59 }
 0x143   : > { %1089 = vmatmul.msk.f32.gmra.mxu2 %vm591_vm9, %v613_v6  ;;  %v592_v49 = vsel %vm591_vm9, %v583_v7, %v1163_v4  ;;  %v596_v29 = vsel %vm591_vm9, %v587_v8, %v1162_v5 }
 0x144   : > { %684 = vmatmul.f32.vlgmr.msrb.gmra.mxu0 %v592_v49  ;;  %696 = vmatmul.f32.gmra.mxu1 %v596_v29 }
 0x147   : > { %v522_v43 = vpop.permute.xlu2 %521 }
 0x148   : > { %v1171_v12 = vpop.permute.xlu1 %1170  ;;  %v1166_v13 = vpop.permute.xlu0 %1165  ;;  %v607_v44 = vsel %vm573_vm8, %v481_v62, %v522_v43 }
 0x149   : > { %v1173_v21 = vunpack.i.h.bf16 %v1171_v12  ;;  %v1172_v22 = vunpack.i.l.bf16 %v1171_v12  ;;  %v1168_v15 = vunpack.i.h.bf16 %v1166_v13  ;;  %v1167_v20 = vunpack.i.l.bf16 %v1166_v13 }
 0x14b   : > { %v575_v19 = vsel %vm573_vm8, %v1296_v51, %v1168_v15  ;;  %v579_v24 = vsel %vm573_vm8, %v1375_v17, %v1167_v20 }
 0x14c   : > { %v584_v27 = vsel %vm582_vm10, %v575_v19, %v1173_v21  ;;  %v588_v57 = vsel %vm582_vm10, %v579_v24, %v1172_v22 }
 0x14d   : > { %v593_v1 = vsel %vm591_vm9, %v584_v27, %v1178_v16  ;;  %v597_v23 = vsel %vm591_vm9, %v588_v57, %v1177_v18 }
 0x14e   : > { %687 = vmatmul.f32.gmra.mxu0 %v593_v1  ;;  %699 = vmatmul.f32.gmra.mxu1 %v597_v23 }
 0x14f   : > { %v414_v47 = vpop.permute.xlu2 %413 }
 0x150   : > { %v562_v28 = vpop.permute.xlu1 %561  ;;  %v520_v31 = vpop.permute.xlu0 %519 }
 0x151   : > { %v606_v51 = vsel %vm573_vm8, %v479_v35, %v520_v31 }
 0x152   : > { %v614_v17 = vsel %vm582_vm10, %v606_v51, %v562_v28 }
 0x153   : > { %1090 = vmatmul.msk.f32.gmra.mxu2 %vm591_vm9, %v614_v17  ;;  %v911_v52 = vpop.f32.mrf.mxu3 }
 0x154   : > { %936 = vrot.lane.b32.xlu2 %v911_v52, %s1189_s6 }
 0x157   : > { %v925_v2 = vpop.permute.xlu2 %924 }
 0x158   : > { %v454_v38 = vpop.permute.xlu1 %453  ;;  %v412_v40 = vpop.permute.xlu0 %411 }
 0x159   : > { %v589_v32 = vsel %vm582_vm10, %v580_v37, %v412_v40 }
 0x15a   : > { %v598_v41 = vsel %vm591_vm9, %v589_v32, %v454_v38 }
 0x15b   : > { %702 = vmatmul.f32.gmra.mxu1 %v598_v41 }
 0x15f   : > { %v931_v7 = vpop.permute.xlu2 %930 }
 0x160   : > { %v564_v45 = vpop.permute.xlu0 %563  ;;  %v372_v39 = vpop.permute.xlu1 %371 }
 0x161   : > { %v615_v46 = vsel %vm582_vm10, %v607_v44, %v564_v45  ;;  %v581_v25 = vsel %vm573_vm8, %v1416_v33, %v372_v39 }
 0x162   : > { %1091 = vmatmul.msk.f32.gmra.mxu2 %vm591_vm9, %v615_v46  ;;  %v590_v34 = vsel %vm582_vm10, %v581_v25, %v414_v47 }
 0x168   : > { %v456_v9 = vpop.permute.xlu0 %455  ;;  %v923_v56 = vpop.permute.xlu1 %922 }
 0x169   : > { %v599_v50 = vsel %vm591_vm9, %v590_v34, %v456_v9 }
 0x16a   : > { %705 = vmatmul.f32.gmra.mxu1 %v599_v50 }
 0x170   : > { %v927_v55 = vpop.permute.xlu0 %926  ;;  %v929_v30 = vpop.permute.xlu1 %928 }
 0x19b   : > { %v726_v53 = vpop.f32.mrf.mxu2 }
 0x19c   : > { %v933_v10 = vpop.permute.xlu0 %932 }
 0x1a3   : > { %v729_v54 = vpop.f32.mrf.mxu2 }
 0x1a7   : > { %v935_v19 = vpop.permute.xlu1 %934 }
 0x1ab   : > { %v691_v58 = vpop.f32.mrf.mxu1  ;;  %v732_v59 = vpop.f32.mrf.mxu2 }
 0x1ac   : > { %v733_v33 = vadd.f32 %v732_v59, %v691_v58 }
 0x1ae   : > { %v948_v60 = vsel %vm591_vm9, %v733_v33, %v927_v55  ;;  %v937_v40 = vpop.permute.xlu2 %936 }
 0x1af   : > { %956 = vst [vmem:[%s1664_s7 + $0x10] sm:$0xff] %v948_v60  ;;  %v977_v1 = vmul.f32 %v948_v60, %v948_v60 }
 0x1b3   : > { %v694_v14 = vpop.f32.mrf.mxu1 }
 0x1b6   : > { %v735_v61 = vpop.f32.mrf.mxu2 }
 0x1b7   : > { %v736_v63 = vadd.f32 %v735_v61, %v694_v14 }
 0x1b9   : > { %v949_v0 = vsel %vm591_vm9, %v736_v63, %v929_v30 }
 0x1ba   : > { %957 = vst [vmem:[%s1664_s7 + $0x18] sm:$0xff] %v949_v0  ;;  %v978_v35 = vmul.f32 %v949_v0, %v949_v0 }
 0x1be   : > { %v738_v3 = vpop.f32.mrf.mxu2 }
 0x1c1   : > { %v685_v4 = vpop.f32.mrf.mxu0  ;;  %v697_v5 = vpop.f32.mrf.mxu1 }
 0x1c2   : > { %v727_v48 = vadd.f32 %v726_v53, %v685_v4  ;;  %v739_v6 = vadd.f32 %v738_v3, %v697_v5 }
 0x1c4   : > { %v946_v8 = vsel %vm591_vm9, %v727_v48, %v923_v56  ;;  %v950_v49 = vsel %vm591_vm9, %v739_v6, %v931_v7 }
 0x1c5   : > { %954 = vst [vmem:[%s1664_s7] sm:$0xff] %v946_v8  ;;  %v975_v16 = vmul.f32 %v946_v8, %v946_v8  ;;  %v979_v36 = vmul.f32 %v950_v49, %v950_v49 }
 0x1c6   : > { %958 = vst [vmem:[%s1664_s7 + $0x20] sm:$0xff] %v950_v49  ;;  %v741_v29 = vpop.f32.mrf.mxu2 }
 0x1cb   : > { %v688_v11 = vpop.f32.mrf.mxu0  ;;  %v700_v12 = vpop.f32.mrf.mxu1 }
 0x1cc   : > { %v730_v13 = vadd.f32 %v729_v54, %v688_v11  ;;  %v742_v21 = vadd.f32 %v741_v29, %v700_v12 }
 0x1ce   : > { %v947_v22 = vsel %vm591_vm9, %v730_v13, %v925_v2  ;;  %v951_v15 = vsel %vm591_vm9, %v742_v21, %v933_v10 }
 0x1cf   : > { %955 = vst [vmem:[%s1664_s7 + $0x8] sm:$0xff] %v947_v22  ;;  %v976_v20 = vmul.f32 %v947_v22, %v947_v22  ;;  %v962_v18 = vadd.f32 %v947_v22, %v946_v8  ;;  %v980_v41 = vmul.f32 %v951_v15, %v951_v15 }
 0x1d0   : > { %959 = vst [vmem:[%s1664_s7 + $0x28] sm:$0xff] %v951_v15 }
 0x1d1   : > { %v983_v27 = vadd.f32 %v976_v20, %v975_v16  ;;  %v963_v23 = vadd.f32 %v962_v18, %v948_v60 }
 0x1d3   : > { %v984_v31 = vadd.f32 %v983_v27, %v977_v1  ;;  %v964_v51 = vadd.f32 %v963_v23, %v949_v0 }
 0x1d5   : > { %v985_v17 = vadd.f32 %v984_v31, %v978_v35  ;;  %v965_v37 = vadd.f32 %v964_v51, %v950_v49 }
 0x1d6   : > { %v744_v24 = vpop.f32.mrf.mxu2 }
 0x1d7   : > { %v986_v38 = vadd.f32 %v985_v17, %v979_v36  ;;  %v966_v32 = vadd.f32 %v965_v37, %v951_v15 }
 0x1d8   : > { %v703_v26 = vpop.f32.mrf.mxu1 }
 0x1d9   : > { %v745_v57 = vadd.f32 %v744_v24, %v703_v26  ;;  %v987_v45 = vadd.f32 %v986_v38, %v980_v41 }
 0x1db   : > { %v952_v28 = vsel %vm591_vm9, %v745_v57, %v935_v19 }
 0x1dc   : > { %960 = vst [vmem:[%s1664_s7 + $0x30] sm:$0xff] %v952_v28  ;;  %v981_v42 = vmul.f32 %v952_v28, %v952_v28  ;;  %v967_v46 = vadd.f32 %v966_v32, %v952_v28 }
 0x1de   : > { %v988_v25 = vadd.f32 %v987_v45, %v981_v42 }
 0x1e5   : > { %v747_v43 = vpop.f32.mrf.mxu2 }
 0x1e7   : > { %v706_v62 = vpop.f32.mrf.mxu1 }
 0x1e8   : > { %v748_v44 = vadd.f32 %v747_v43, %v706_v62 }
 0x1ea   : > { %v953_v39 = vsel %vm591_vm9, %v748_v44, %v937_v40 }
 0x1eb   : > { %961 = vst [vmem:[%s1664_s7 + $0x38] sm:$0xff] %v953_v39  ;;  %v968_v47 = vadd.f32 %v967_v46, %v953_v39  ;;  %v982_v9 = vmul.f32 %v953_v39, %v953_v39 }
 0x1ed   : > { %v969_v34 = vrot.slane %v968_v47, 4  ;;  %v989_v50 = vadd.f32 %v988_v25, %v982_v9 }
 0x1ef   : > { %v970_v52 = vadd.f32 %v969_v34, %v968_v47  ;;  %v990_v53 = vrot.slane %v989_v50, 4 }
 0x1f1   : > { %v971_v54 = vrot.slane %v970_v52, 2  ;;  %v991_v55 = vadd.f32 %v990_v53, %v989_v50 }
 0x1f3   : > { %v972_v56 = vadd.f32 %v971_v54, %v970_v52  ;;  %v992_v58 = vrot.slane %v991_v55, 2 }
 0x1f5   : > { %v973_v59 = vrot.slane %v972_v56, 1  ;;  %v993_v33 = vadd.f32 %v992_v58, %v991_v55 }
 0x1f7   : > { %v994_v60 = vrot.slane %v993_v33, 1  ;;  %v974_v30 = vadd.f32 %v973_v59, %v972_v56  ;;  %1000 = sbr.rel (%p1101_p4) target bundleno = 510 (0x1fe), region = 40 }
 0x1f9   : > { %v995_v14 = vadd.f32 %v994_v60, %v993_v33 }
 0x1fb   : > { %v996_v61 = vsel %vm750_vm2, %v974_v30, %v995_v14 }
 0x1fc   : > { %v1190_v63 = vmov 0.0  }
 0x1fd   : > { %1001 = vst [vmem:[%s1701_s5] sm:$0x3] %v1190_v63 }
 0x1fe PF:  {}
 0x204   : > { %v1002_v0 = vld [vmem:[%s1701_s5] sm:$0x3] }
 0x205   : > { %v1003_v2 = vadd.f32 %v1002_v0, %v996_v61 }
 0x207   : > { %1004 = vst [vmem:[%s1701_s5] sm:$0x3] %v1003_v2 }
 0x208 PF: > { %s16_s18 = sadd.s32 1, %s1185_s18  }
 0x209   : > { %p13_p5 = scmp.ge.s32.totalorder %s16_s18, 4  }
 0x20b   :  { %15 = sbr.rel (!%p13_p5) target bundleno = 1 (0x1), region = 78 }

// kernel: inception_backbone.10
= control target key start
LH: loop header
LB: loop body
LE: loop exit
PB: predicated region body
PF: predicated region fallthrough
CT: control target
= control target key end

     0   :  { %s1170_s18 = smov 0   ;;  %s1759_s0 = inlined_call_operand.vmem [shape: f32[2,64,128], index: 0, kind: input, shape index: {}]   ;;  %s1760_s1 = inlined_call_operand.vmem [shape: f32[128,32], index: 1, kind: input, shape index: {}]   ;;  %s1761_s2 = inlined_call_operand.vmem [shape: f32[224,96], index: 2, kind: input, shape index: {}]   ;;  %s1762_s3 = inlined_call_operand.vmem [shape: f32[128,32], index: 3, kind: input, shape index: {}]   ;;  %s1763_s4 = inlined_call_operand.vmem [shape: f32[2,64,128], index: 4, kind: output, shape index: {0}]   ;;  %s1764_s5 = inlined_call_operand.vmem [shape: f32[2,128], index: 5, kind: output, shape index: {1}]  }
   0x1 LB: > { %s1176_s19 = sadd.s32 4294967295, %s1134_s18   ;;  %p1053_p0 = scmp.ge.s32.totalorder %s1134_s18, 1  ;;  %s1134_s18 = sphi %s1170_s18, %s16_s18  }
   0x2   : > { %p185_p1 = scmp.lt.s32.totalorder %s1134_s18, 3 }
   0x4   : > { %p186_p2 = pnand %p1053_p0, %p185_p1 }
   0x5   : > { %p213_p3 = scmp.lt.s32.totalorder (!%p186_p2), %s1176_s19, 1  ;;  %s1136_s24 = smov (!%p186_p2), 32  }
   0x6   : > { %189 = sbr.rel (%p186_p2) target bundleno = 541 (0x21d), region = 36  ;;  %s1137_s25 = smov (!%p186_p2), 64  }
   0x7   : > { %s1138_s27 = smov (!%p186_p2), 96   ;;  %p1066_p4 = scmp.ne.s32.totalorder (!%p186_p2), %s1176_s19, 0 }
   0xb   : > { %v246_v0 = vld [vmem:[%s1760_s1 + $0x78] sm:$0xff]  ;;  %v245_v1 = vld [vmem:[%s1760_s1 + $0x70] sm:$0xff]  ;;  %v244_v2 = vld [vmem:[%s1760_s1 + $0x68] sm:$0xff]  ;;  %s1191_s26 = scalar_select %p213_p3, %s1176_s19, 1  ;;  %vm745_vm0 = vcmask 1040384   ;;  %vm325_vm1 = vcmask 1046528  }
   0xc   : > { %247 = vmatpush.msra.mxu0 %v246_v0  ;;  %v243_v3 = vld [vmem:[%s1760_s1 + $0x60] sm:$0xff]  ;;  %v242_v4 = vld [vmem:[%s1760_s1 + $0x58] sm:$0xff]  ;;  %v241_v8 = vld [vmem:[%s1760_s1 + $0x50] sm:$0xff]  ;;  %vm367_vm2 = vcmask 1045504   ;;  %vm296_vm3 = vcmask 1042432   ;;  %vm518_vm4 = vcmask 1041408  }
   0xd   : > { %s1069_s29 = sshll.u32 %s1191_s26, 6  ;;  %v240_v10 = vld [vmem:[%s1760_s1 + $0x48] sm:$0xff]  ;;  %v239_v12 = vld [vmem:[%s1760_s1 + $0x40] sm:$0xff]  ;;  %v238_v13 = vld [vmem:[%s1760_s1 + $0x38] sm:$0xff]  ;;  %vm409_vm5 = vcmask 1044480   ;;  %vm451_vm6 = vcmask 1043456  }
   0xe   : > { %248 = vmatpush.msra.mxu0 %v245_v1  ;;  %s1202_s7 = scalar_lea.vmem %s1759_s0, %s1069_s29  ;;  %v237_v15 = vld [vmem:[%s1760_s1 + $0x30] sm:$0xff]  ;;  %v236_v17 = vld [vmem:[%s1760_s1 + $0x28] sm:$0xff]  ;;  %v235_v19 = vld [vmem:[%s1760_s1 + $0x20] sm:$0xff]  ;;  %vm569_vm7 = vcmask 523264   ;;  %vm560_vm8 = vcmask 261120   ;;  %vm578_vm9 = vcmask 785408   ;;  %s1727_s28 = scalar_lea.vmem %s1763_s4, %s1069_s29 }
   0xf   : > { %v1208_v5 = vld [vmem:[%s1202_s7] sm:$0xff]  ;;  %v224_v7 = vld [vmem:[%s1202_s7 + $0x8] sm:$0xff]  ;;  %v225_v14 = vld [vmem:[%s1202_s7 + $0x10] sm:$0xff] }
  0x10   : > { %249 = vmatpush.msra.mxu0 %v244_v2  ;;  %v746_v6 = vrot.slane %v1208_v5, 7  ;;  %v747_v9 = vrot.slane %v224_v7, 7  ;;  %v749_v16 = vrot.slane %v225_v14, 7  ;;  %v234_v20 = vld [vmem:[%s1760_s1 + $0x18] sm:$0xff]  ;;  %v233_v22 = vld [vmem:[%s1760_s1 + $0x10] sm:$0xff]  ;;  %v232_v24 = vld [vmem:[%s1760_s1 + $0x8] sm:$0xff] }
  0x11   : > { %v226_v21 = vld [vmem:[%s1202_s7 + $0x18] sm:$0xff]  ;;  %v231_v26 = vld [vmem:[%s1760_s1] sm:$0xff]  ;;  %v228_v30 = vld [vmem:[%s1202_s7 + $0x28] sm:$0xff] }
  0x12   : > { %250 = vmatpush.msra.mxu0 %v243_v3  ;;  %v1221_v11 = vsel %vm745_vm0, %v746_v6, %v747_v9  ;;  %v1237_v18 = vsel %vm745_vm0, %v747_v9, %v749_v16  ;;  %v751_v23 = vrot.slane %v226_v21, 7  ;;  %v227_v27 = vld [vmem:[%s1202_s7 + $0x20] sm:$0xff]  ;;  %v755_v31 = vrot.slane %v228_v30, 7  ;;  %v229_v33 = vld [vmem:[%s1202_s7 + $0x30] sm:$0xff]  ;;  %v1272_v36 = vld [vmem:[%s1202_s7 + $0x38] sm:$0xff] }
  0x13   : > { %v753_v28 = vrot.slane %v227_v27, 7  ;;  %v757_v34 = vrot.slane %v229_v33, 7  ;;  %v759_v37 = vrot.slane %v1272_v36, 7  ;;  %v855_v39 = vld [vmem:[%s1762_s3 + $0x78] sm:$0xff]  ;;  %v854_v40 = vld [vmem:[%s1762_s3 + $0x70] sm:$0xff]  ;;  %v853_v41 = vld [vmem:[%s1762_s3 + $0x68] sm:$0xff] }
  0x14   : > { %251 = vmatpush.msra.mxu0 %v242_v4  ;;  %v1253_v25 = vsel %vm745_vm0, %v749_v16, %v751_v23  ;;  %856 = vmatpush.msra.mxu3 %v855_v39  ;;  %v852_v42 = vld [vmem:[%s1762_s3 + $0x60] sm:$0xff]  ;;  %v851_v43 = vld [vmem:[%s1762_s3 + $0x58] sm:$0xff]  ;;  %v850_v44 = vld [vmem:[%s1762_s3 + $0x50] sm:$0xff]  ;;  %v770_v50 = vsel %vm745_vm0, -inf, %v746_v6  ;;  %v775_v53 = vrot.slane %v1221_v11, 1  ;;  %v808_v59 = vrot.slane %v1221_v11, 2 }
  0x15   : > { %v1261_v29 = vsel %vm745_vm0, %v751_v23, %v753_v28  ;;  %v1265_v32 = vsel %vm745_vm0, %v753_v28, %v755_v31  ;;  %v1269_v35 = vsel %vm745_vm0, %v755_v31, %v757_v34  ;;  %v1278_v38 = vsel %vm745_vm0, %v757_v34, %v759_v37  ;;  %v849_v45 = vld [vmem:[%s1762_s3 + $0x48] sm:$0xff]  ;;  %v848_v46 = vld [vmem:[%s1762_s3 + $0x40] sm:$0xff]  ;;  %v847_v47 = vld [vmem:[%s1762_s3 + $0x38] sm:$0xff] }
  0x16   : > { %252 = vmatpush.msra.mxu0 %v241_v8  ;;  %857 = vmatpush.msra.mxu3 %v854_v40  ;;  %v846_v48 = vld [vmem:[%s1762_s3 + $0x30] sm:$0xff]  ;;  %v845_v49 = vld [vmem:[%s1762_s3 + $0x28] sm:$0xff]  ;;  %v844_v51 = vld [vmem:[%s1762_s3 + $0x20] sm:$0xff]  ;;  %v774_v52 = vrot.slane %v770_v50, 1  ;;  %v807_v55 = vrot.slane %v770_v50, 2  ;;  %v777_v1 = vrot.slane %v1237_v18, 1 }
  0x17   : > { %v843_v54 = vld [vmem:[%s1762_s3 + $0x18] sm:$0xff]  ;;  %v842_v56 = vld [vmem:[%s1762_s3 + $0x10] sm:$0xff]  ;;  %v841_v57 = vld [vmem:[%s1762_s3 + $0x8] sm:$0xff]  ;;  %v810_v4 = vrot.slane %v1237_v18, 2  ;;  %v779_v9 = vrot.slane %v1253_v25, 1  ;;  %v812_v16 = vrot.slane %v1253_v25, 2 }
  0x18   : > { %253 = vmatpush.msra.mxu0 %v240_v10  ;;  %858 = vmatpush.msra.mxu3 %v853_v41  ;;  %v776_v58 = vsel %vm325_vm1, %v774_v52, %v775_v53  ;;  %v809_v61 = vsel %vm367_vm2, %v807_v55, %v808_v59  ;;  %v840_v62 = vld [vmem:[%s1762_s3] sm:$0xff]  ;;  %v778_v3 = vsel %vm325_vm1, %v775_v53, %v777_v1  ;;  %v781_v28 = vrot.slane %v1261_v29, 1 }
  0x19   : > { %v799_v60 = vmax.f32 %v770_v50, %v776_v58  ;;  %v811_v6 = vsel %vm367_vm2, %v808_v59, %v810_v4  ;;  %v814_v50 = vrot.slane %v1261_v29, 2 }
  0x1a   : > { %254 = vmatpush.msra.mxu0 %v239_v12  ;;  %859 = vmatpush.msra.mxu3 %v852_v42 }
  0x1b   : > { %v832_v63 = vmax.f32 %v799_v60, %v809_v61  ;;  %v783_v60 = vrot.slane %v1265_v32, 1 }
  0x1c   : > { %255 = vmatpush.msra.mxu0 %v238_v13  ;;  %860 = vmatpush.msra.mxu3 %v851_v43 }
  0x1e   : > { %256 = vmatpush.msra.mxu0 %v237_v15  ;;  %861 = vmatpush.msra.mxu3 %v850_v44 }
  0x20   : > { %257 = vmatpush.msra.mxu0 %v236_v17  ;;  %862 = vmatpush.msra.mxu3 %v849_v45 }
  0x22   : > { %258 = vmatpush.msra.mxu0 %v235_v19  ;;  %863 = vmatpush.msra.mxu3 %v848_v46 }
  0x24   : > { %259 = vmatpush.msra.mxu0 %v234_v20  ;;  %864 = vmatpush.msra.mxu3 %v847_v47  ;;  %v813_v20 = vsel %vm367_vm2, %v810_v4, %v812_v16  ;;  %v816_v4 = vrot.slane %v1265_v32, 2 }
  0x26   : > { %260 = vmatpush.msra.mxu0 %v233_v22  ;;  %865 = vmatpush.msra.mxu3 %v846_v48 }
  0x28   : > { %261 = vmatpush.msra.mxu0 %v232_v24  ;;  %866 = vmatpush.msra.mxu3 %v845_v49  ;;  %v782_v49 = vsel %vm325_vm1, %v779_v9, %v781_v28 }
  0x2a   : > { %262 = vmatpush.msra.mxu0 %v231_v26  ;;  %867 = vmatpush.msra.mxu3 %v844_v51  ;;  %v802_v51 = vmax.f32 %v1253_v25, %v782_v49 }
  0x2b   : > { %263 = vmatmul.f32.vlgmr.msra.gmra.mxu0 %v1208_v5  ;;  %v800_v5 = vmax.f32 %v1221_v11, %v778_v3  ;;  %v780_v11 = vsel %vm325_vm1, %v777_v1, %v779_v9  ;;  %v784_v3 = vsel %vm325_vm1, %v781_v28, %v783_v60 }
  0x2c   : > { %868 = vmatpush.msra.mxu3 %v843_v54  ;;  %v801_v19 = vmax.f32 %v1237_v18, %v780_v11  ;;  %v815_v54 = vsel %vm367_vm2, %v812_v16, %v814_v50 }
  0x2d   : > { %v833_v8 = vmax.f32 %v800_v5, %v811_v6  ;;  %v803_v6 = vmax.f32 %v1261_v29, %v784_v3 }
  0x2e   : > { %869 = vmatpush.msra.mxu3 %v842_v56  ;;  %v834_v24 = vmax.f32 %v801_v19, %v813_v20  ;;  %v835_v56 = vmax.f32 %v802_v51, %v815_v54 }
  0x30   : > { %870 = vmatpush.msra.mxu3 %v841_v57 }
  0x32   : > { %871 = vmatpush.msra.mxu3 %v840_v62 }
  0x33   : > { %266 = vmatmul.f32.gmra.mxu0 %v224_v7  ;;  %872 = vmatmul.f32.vlgmr.msra.gmra.mxu3 %v832_v63 }
  0x3b   : > { %269 = vmatmul.f32.gmra.mxu0 %v225_v14  ;;  %875 = vmatmul.f32.gmra.mxu3 %v833_v8  ;;  %v817_v8 = vsel %vm367_vm2, %v814_v50, %v816_v4 }
  0x3c   : > { %v836_v11 = vmax.f32 %v803_v6, %v817_v8 }
  0x43   : > { %272 = vmatmul.f32.gmra.mxu0 %v226_v21  ;;  %878 = vmatmul.f32.gmra.mxu3 %v834_v24 }
  0x4b   : > { %275 = vmatmul.f32.gmra.mxu0 %v227_v27  ;;  %881 = vmatmul.f32.gmra.mxu3 %v835_v56 }
  0x53   : > { %278 = vmatmul.f32.gmra.mxu0 %v228_v30  ;;  %884 = vmatmul.f32.gmra.mxu3 %v836_v11 }
  0x5b   : > { %281 = vmatmul.f32.gmra.mxu0 %v229_v33 }
  0x63   : > { %284 = vmatmul.f32.gmra.mxu0 %v1272_v36 }
  0xa8   : > { %v264_v0 = vpop.f32.mrf.mxu0 }
  0xa9   : > { %v297_v2 = vrot.slane %v264_v0, 5 }
  0xab   : > { %v1343_v10 = vsel %vm296_vm3, 0.0, %v297_v2 }
  0xac   : > { %v477_v14 = vrot.slane %v1343_v10, 5  ;;  %v519_v31 = vrot.slane %v1343_v10, 6  ;;  %v410_v18 = vrot.slane %v1343_v10, 3  ;;  %v326_v34 = vrot.slane %v1343_v10, 1 }
  0xad   : > { %v368_v58 = vrot.slane %v1343_v10, 2 }
  0xb0   : > { %v267_v7 = vpop.f32.mrf.mxu0 }
  0xb1   : > { %v298_v12 = vrot.slane %v267_v7, 5 }
  0xb3   : > { %v1346_v13 = vsel %vm296_vm3, %v297_v2, %v298_v12 }
  0xb4   : > { %v478_v15 = vrot.slane %v1346_v13, 5  ;;  %v520_v23 = vrot.slane %v1346_v13, 6  ;;  %v411_v26 = vrot.slane %v1346_v13, 3  ;;  %v327_v27 = vrot.slane %v1346_v13, 1 }
  0xb5   : > { %v369_v53 = vrot.slane %v1346_v13, 2 }
  0xb6   : > { %v479_v17 = vsel %vm296_vm3, %v477_v14, %v478_v15  ;;  %v521_v40 = vsel %vm518_vm4, %v519_v31, %v520_v23  ;;  %v412_v41 = vsel %vm409_vm5, %v410_v18, %v411_v26  ;;  %v328_v43 = vsel %vm325_vm1, %v326_v34, %v327_v27 }
  0xb7   : > { %494 = vrot.lane.b32.xlu0 %v479_v17, %s1136_s24  ;;  %v370_v61 = vsel %vm367_vm2, %v368_v58, %v369_v53 }
  0xb8   : > { %v270_v21 = vpop.f32.mrf.mxu0 }
  0xb9   : > { %v300_v22 = vrot.slane %v270_v21, 5 }
  0xbb   : > { %v1361_v30 = vsel %vm296_vm3, %v298_v12, %v300_v22 }
  0xbc   : > { %v413_v33 = vrot.slane %v1361_v30, 3  ;;  %v329_v39 = vrot.slane %v1361_v30, 1  ;;  %v371_v48 = vrot.slane %v1361_v30, 2  ;;  %v522_v52 = vrot.slane %v1361_v30, 6 }
  0xbd   : > { %v480_v57 = vrot.slane %v1361_v30, 5 }
  0xbe   : > { %v414_v42 = vsel %vm409_vm5, %v411_v26, %v413_v33  ;;  %v330_v44 = vsel %vm325_vm1, %v327_v27, %v329_v39  ;;  %v372_v59 = vsel %vm367_vm2, %v369_v53, %v371_v48  ;;  %v523_v25 = vsel %vm518_vm4, %v520_v23, %v522_v52 }
  0xbf   : > { %536 = vrot.lane.b32.xlu0 %v521_v40, %s1137_s25  ;;  %v1093_v45 = vpack.i.bf16 %v414_v42, %v412_v41  ;;  %v1083_v46 = vpack.i.bf16 %v330_v44, %v328_v43  ;;  %v1088_v63 = vpack.i.bf16 %v372_v59, %v370_v61  ;;  %v481_v1 = vsel %vm296_vm3, %v478_v15, %v480_v57 }
  0xc0   : > { %v273_v47 = vpop.f32.mrf.mxu0  ;;  %v785_v15 = vrot.slane %v1269_v35, 1  ;;  %v818_v26 = vrot.slane %v1269_v35, 2  ;;  %v787_v43 = vrot.slane %v1278_v38, 1 }
  0xc1   : > { %1094 = vrot.lane.b32.xlu2 %v1093_v45, %s1138_s27  ;;  %1084 = vrot.lane.b32.xlu1 %v1083_v46, %s1136_s24  ;;  %v302_v55 = vrot.slane %v273_v47, 5 }
  0xc2   : > { %v786_v24 = vsel %vm325_vm1, %v783_v60, %v785_v15  ;;  %v819_v18 = vsel %vm367_vm2, %v816_v4, %v818_v26 }
  0xc3   : > { %v1394_v62 = vsel %vm296_vm3, %v300_v22, %v302_v55  ;;  %v804_v31 = vmax.f32 %v1265_v32, %v786_v24 }
  0xc4   : > { %v331_v5 = vrot.slane %v1394_v62, 1  ;;  %v524_v9 = vrot.slane %v1394_v62, 6  ;;  %v482_v12 = vrot.slane %v1394_v62, 5  ;;  %v415_v27 = vrot.slane %v1394_v62, 3 }
  0xc5   : > { %v373_v28 = vrot.slane %v1394_v62, 2  ;;  %v837_v42 = vmax.f32 %v804_v31, %v819_v18 }
  0xc6   : > { %v332_v16 = vsel %vm325_vm1, %v329_v39, %v331_v5  ;;  %v525_v20 = vsel %vm518_vm4, %v522_v52, %v524_v9  ;;  %v483_v21 = vsel %vm296_vm3, %v480_v57, %v482_v12  ;;  %v416_v32 = vsel %vm409_vm5, %v413_v33, %v415_v27 }
  0xc7   : > { %538 = vrot.lane.b32.xlu0 %v523_v25, %s1137_s25  ;;  %v374_v44 = vsel %vm367_vm2, %v371_v48, %v373_v28  ;;  %887 = vmatmul.f32.gmra.mxu3 %v837_v42  ;;  %v788_v33 = vsel %vm325_vm1, %v785_v15, %v787_v43  ;;  %v820_v48 = vrot.slane %v1278_v38, 2 }
  0xc8   : > { %v276_v0 = vpop.f32.mrf.mxu0  ;;  %v805_v53 = vmax.f32 %v1269_v35, %v788_v33  ;;  %v629_v33 = vld [vmem:[%s1761_s2 + $0xd0] sm:$0xff] }
  0xc9   : > { %v304_v2 = vrot.slane %v276_v0, 5  ;;  %496 = vrot.lane.b32.xlu2 %v481_v1, %s1136_s24  ;;  %1089 = vrot.lane.b32.xlu1 %v1088_v63, %s1137_s25  ;;  %v821_v57 = vsel %vm367_vm2, %v818_v26, %v820_v48 }
  0xca   : > { %v838_v61 = vmax.f32 %v805_v53, %v821_v57  ;;  %v617_v57 = vld [vmem:[%s1761_s2 + $0x70] sm:$0xff] }
  0xcb   : > { %v1405_v7 = vsel %vm296_vm3, %v302_v55, %v304_v2 }
  0xcc   : > { %v333_v14 = vrot.slane %v1405_v7, 1  ;;  %v417_v22 = vrot.slane %v1405_v7, 3  ;;  %v375_v23 = vrot.slane %v1405_v7, 2  ;;  %v484_v41 = vrot.slane %v1405_v7, 5 }
  0xcd   : > { %v526_v52 = vrot.slane %v1405_v7, 6 }
  0xce   : > { %v334_v29 = vsel %vm325_vm1, %v331_v5, %v333_v14  ;;  %v418_v34 = vsel %vm409_vm5, %v415_v27, %v417_v22  ;;  %v376_v39 = vsel %vm367_vm2, %v373_v28, %v375_v23  ;;  %v485_v51 = vsel %vm296_vm3, %v482_v12, %v484_v41 }
  0xcf   : > { %v1098_v17 = vpack.i.bf16 %v334_v29, %v332_v16  ;;  %v1108_v45 = vpack.i.bf16 %v418_v34, %v416_v32  ;;  %v1103_v46 = vpack.i.bf16 %v376_v39, %v374_v44  ;;  %v527_v58 = vsel %vm518_vm4, %v524_v9, %v526_v52  ;;  %890 = vmatmul.f32.gmra.mxu3 %v838_v61  ;;  %v616_v61 = vld [vmem:[%s1761_s2 + $0x68] sm:$0xff] }
  0xd0   : > { %v279_v19 = vpop.f32.mrf.mxu0  ;;  %v771_v32 = vsel %vm745_vm0, %v759_v37, -inf  ;;  %v630_v37 = vld [vmem:[%s1761_s2 + $0xd8] sm:$0xff] }
  0xd1   : > { %540 = vrot.lane.b32.xlu2 %v525_v20, %s1137_s25  ;;  %498 = vrot.lane.b32.xlu1 %v483_v21, %s1136_s24  ;;  %v306_v40 = vrot.slane %v279_v19, 5 }
  0xd2   : > { %1099 = vrot.lane.b32.xlu0 %v1098_v17, %s1136_s24  ;;  %700 = vmatpush.msra.mxu2 %v630_v37 }
  0xd3   : > { %v1444_v49 = vsel %vm296_vm3, %v304_v2, %v306_v40 }
  0xd4   : > { %v486_v54 = vrot.slane %v1444_v49, 5  ;;  %v528_v56 = vrot.slane %v1444_v49, 6  ;;  %v419_v2 = vrot.slane %v1444_v49, 3  ;;  %v377_v3 = vrot.slane %v1444_v49, 2  ;;  %701 = vmatpush.msra.mxu2 %v629_v33 }
  0xd5   : > { %v335_v4 = vrot.slane %v1444_v49, 1 }
  0xd6   : > { %v487_v60 = vsel %vm296_vm3, %v484_v41, %v486_v54  ;;  %v529_v0 = vsel %vm518_vm4, %v526_v52, %v528_v56  ;;  %v420_v17 = vsel %vm409_vm5, %v417_v22, %v419_v2  ;;  %v378_v19 = vsel %vm367_vm2, %v375_v23, %v377_v3 }
  0xd7   : > { %v336_v20 = vsel %vm325_vm1, %v333_v14, %v335_v4 }
  0xd8   : > { %v282_v47 = vpop.f32.mrf.mxu0 }
  0xd9   : > { %v308_v50 = vrot.slane %v282_v47, 5  ;;  %1109 = vrot.lane.b32.xlu2 %v1108_v45, %s1138_s27  ;;  %1104 = vrot.lane.b32.xlu1 %v1103_v46, %s1137_s25  ;;  %v789_v45 = vrot.slane %v771_v32, 1  ;;  %v822_v46 = vrot.slane %v771_v32, 2 }
  0xda   : > { %500 = vrot.lane.b32.xlu0 %v485_v51, %s1136_s24 }
  0xdb   : > { %v1458_v55 = vsel %vm296_vm3, %v306_v40, %v308_v50  ;;  %v790_v52 = vsel %vm325_vm1, %v787_v43, %v789_v45  ;;  %v823_v53 = vsel %vm367_vm2, %v820_v48, %v822_v46  ;;  %v628_v43 = vld [vmem:[%s1761_s2 + $0xc8] sm:$0xff]  ;;  %v455_v46 = vrot.slane %v1361_v30, 4 }
  0xdc   : > { %v379_v25 = vrot.slane %v1458_v55, 2  ;;  %v337_v35 = vrot.slane %v1458_v55, 1  ;;  %v421_v1 = vrot.slane %v1458_v55, 3  ;;  %v530_v23 = vrot.slane %v1458_v55, 6  ;;  %702 = vmatpush.msra.mxu2 %v628_v43 }
  0xdd   : > { %v488_v18 = vrot.slane %v1458_v55, 5 }
  0xde   : > { %v380_v8 = vsel %vm367_vm2, %v377_v3, %v379_v25  ;;  %v338_v9 = vsel %vm325_vm1, %v335_v4, %v337_v35  ;;  %v422_v15 = vsel %vm409_vm5, %v419_v2, %v421_v1  ;;  %v531_v39 = vsel %vm518_vm4, %v528_v56, %v530_v23  ;;  %v618_v56 = vld [vmem:[%s1761_s2 + $0x78] sm:$0xff] }
  0xdf   : > { %v1118_v21 = vpack.i.bf16 %v380_v8, %v378_v19  ;;  %v1113_v24 = vpack.i.bf16 %v338_v9, %v336_v20  ;;  %v1123_v28 = vpack.i.bf16 %v422_v15, %v420_v17  ;;  %v489_v40 = vsel %vm296_vm3, %v486_v54, %v488_v18  ;;  %655 = vmatpush.msra.mxu1 %v618_v56  ;;  %v614_v4 = vld [vmem:[%s1761_s2 + $0x58] sm:$0xff]  ;;  %v613_v8 = vld [vmem:[%s1761_s2 + $0x50] sm:$0xff]  ;;  %v619_v17 = vld [vmem:[%s1761_s2 + $0x80] sm:$0xff] }
  0xe0   : > { %v285_v59 = vpop.f32.mrf.mxu0  ;;  %v806_v54 = vmax.f32 %v1278_v38, %v790_v52  ;;  %v622_v9 = vld [vmem:[%s1761_s2 + $0x98] sm:$0xff]  ;;  %v621_v15 = vld [vmem:[%s1761_s2 + $0x90] sm:$0xff]  ;;  %v608_v20 = vld [vmem:[%s1761_s2 + $0x28] sm:$0xff] }
  0xe1   : > { %v310_v63 = vrot.slane %v285_v59, 5  ;;  %542 = vrot.lane.b32.xlu1 %v527_v58, %s1137_s25  ;;  %502 = vrot.lane.b32.xlu2 %v487_v60, %s1136_s24  ;;  %v627_v59 = vld [vmem:[%s1761_s2 + $0xc0] sm:$0xff]  ;;  %v609_v19 = vld [vmem:[%s1761_s2 + $0x30] sm:$0xff] }
  0xe2   : > { %544 = vrot.lane.b32.xlu0 %v529_v0, %s1137_s25  ;;  %v839_v58 = vmax.f32 %v806_v54, %v823_v53  ;;  %656 = vmatpush.msra.mxu1 %v617_v57  ;;  %v615_v0 = vld [vmem:[%s1761_s2 + $0x60] sm:$0xff] }
  0xe3   : > { %v1477_v5 = vsel %vm296_vm3, %v308_v50, %v310_v63  ;;  %v1480_v6 = vsel %vm296_vm3, %v310_v63, 0.0  ;;  %703 = vmatpush.msra.mxu2 %v627_v59  ;;  %v625_v63 = vld [vmem:[%s1761_s2 + $0xb0] sm:$0xff] }
  0xe4   : > { %v532_v12 = vrot.slane %v1477_v5, 6  ;;  %v423_v11 = vrot.slane %v1477_v5, 3  ;;  %v534_v16 = vrot.slane %v1480_v6, 6  ;;  %v425_v29 = vrot.slane %v1480_v6, 3  ;;  %893 = vmatmul.f32.gmra.mxu3 %v839_v58  ;;  %657 = vmatpush.msra.mxu1 %v616_v61 }
  0xe5   : > { %v465_v31 = vrot.slane %v1477_v5, 4  ;;  %v467_v22 = vrot.slane %v1480_v6, 4  ;;  %v490_v34 = vrot.slane %v1477_v5, 5  ;;  %v339_v42 = vrot.slane %v1477_v5, 1 }
  0xe6   : > { %v535_v26 = vsel %vm518_vm4, %v532_v12, %v534_v16  ;;  %v1502_v27 = vsel %vm409_vm5, %v423_v11, %v425_v29  ;;  %v381_v44 = vrot.slane %v1477_v5, 2  ;;  %v533_v47 = vsel %vm518_vm4, %v530_v23, %v532_v12  ;;  %658 = vmatpush.msra.mxu1 %v615_v0  ;;  %v612_v12 = vld [vmem:[%s1761_s2 + $0x48] sm:$0xff]  ;;  %v610_v29 = vld [vmem:[%s1761_s2 + $0x38] sm:$0xff] }
  0xe7   : > { %v1512_v14 = vsel %vm451_vm6, %v465_v31, %v467_v22  ;;  %v491_v41 = vsel %vm296_vm3, %v488_v18, %v490_v34  ;;  %v340_v50 = vsel %vm325_vm1, %v337_v35, %v339_v42  ;;  %v492_v36 = vrot.slane %v1480_v6, 5  ;;  %v626_v35 = vld [vmem:[%s1761_s2 + $0xb8] sm:$0xff]  ;;  %v620_v16 = vld [vmem:[%s1761_s2 + $0x88] sm:$0xff] }
  0xe8   : > { %v382_v51 = vsel %vm367_vm2, %v379_v25, %v381_v44  ;;  %v424_v48 = vsel %vm409_vm5, %v421_v1, %v423_v11  ;;  %v341_v60 = vrot.slane %v1480_v6, 1  ;;  %v383_v25 = vrot.slane %v1480_v6, 2  ;;  %704 = vmatpush.msra.mxu2 %v626_v35  ;;  %v624_v1 = vld [vmem:[%s1761_s2 + $0xa8] sm:$0xff]  ;;  %v623_v6 = vld [vmem:[%s1761_s2 + $0xa0] sm:$0xff]  ;;  %659 = vmatpush.msra.mxu1 %v614_v4 }
  0xe9   : > { %1119 = vrot.lane.b32.xlu2 %v1118_v21, %s1137_s25  ;;  %1114 = vrot.lane.b32.xlu1 %v1113_v24, %s1136_s24  ;;  %v493_v38 = vsel %vm296_vm3, %v490_v34, %v492_v36  ;;  %v611_v11 = vld [vmem:[%s1761_s2 + $0x40] sm:$0xff]  ;;  %v606_v24 = vld [vmem:[%s1761_s2 + $0x18] sm:$0xff]  ;;  %v453_v34 = vrot.slane %v1346_v13, 4 }
  0xea   : > { %1124 = vrot.lane.b32.xlu0 %v1123_v28, %s1138_s27  ;;  %v342_v2 = vsel %vm325_vm1, %v339_v42, %v341_v60  ;;  %v384_v3 = vsel %vm367_vm2, %v381_v44, %v383_v25  ;;  %705 = vmatpush.msra.mxu2 %v625_v63  ;;  %v607_v21 = vld [vmem:[%s1761_s2 + $0x20] sm:$0xff]  ;;  %v457_v60 = vrot.slane %v1394_v62, 4 }
  0xeb   : > { %660 = vmatpush.msra.mxu1 %v613_v8  ;;  %v603_v28 = vld [vmem:[%s1761_s2] sm:$0xff] }
  0xec   : > { %706 = vmatpush.msra.mxu2 %v624_v1  ;;  %v458_v61 = vsel %vm451_vm6, %v455_v46, %v457_v60 }
  0xed   : > { %661 = vmatpush.msra.mxu1 %v612_v12 }
  0xee   : > { %707 = vmatpush.msra.mxu2 %v623_v6 }
  0xef   : > { %662 = vmatpush.msra.mxu1 %v611_v11 }
  0xf0   : > { %708 = vmatpush.msra.mxu2 %v622_v9 }
  0xf1   : > { %546 = vrot.lane.b32.xlu2 %v531_v39, %s1137_s25  ;;  %504 = vrot.lane.b32.xlu1 %v489_v40, %s1136_s24  ;;  %v873_v39 = vpop.f32.mrf.mxu3  ;;  %v452_v40 = vrot.slane %v1343_v10, 4 }
  0xf2   : > { %506 = vrot.lane.b32.xlu0 %v491_v41, %s1136_s24  ;;  %709 = vmatpush.msra.mxu2 %v621_v15 }
  0xf3   : > { %663 = vmatpush.msra.mxu1 %v610_v29  ;;  %v454_v41 = vsel %vm451_vm6, %v452_v40, %v453_v34  ;;  %v459_v29 = vrot.slane %v1405_v7, 4  ;;  %v461_v40 = vrot.slane %v1444_v49, 4 }
  0xf4   : > { %710 = vmatpush.msra.mxu2 %v620_v16 }
  0xf5   : > { %664 = vmatpush.msra.mxu1 %v609_v19 }
  0xf6   : > { %711 = vmatpush.msra.mxu2 %v619_v17 }
  0xf7   : > { %665 = vmatpush.msra.mxu1 %v608_v20 }
  0xf9   : > { %548 = vrot.lane.b32.xlu1 %v533_v47, %s1137_s25  ;;  %355 = vrot.lane.b32.xlu2 %v340_v50, %s1136_s24  ;;  %v876_v50 = vpop.f32.mrf.mxu3 }
  0xfa   : > { %397 = vrot.lane.b32.xlu0 %v382_v51, %s1137_s25  ;;  %666 = vmatpush.msra.mxu1 %v607_v21  ;;  %v456_v51 = vsel %vm451_vm6, %v453_v34, %v455_v46 }
  0xfc   : > { %667 = vmatpush.msra.mxu1 %v606_v24  ;;  %v460_v24 = vsel %vm451_vm6, %v457_v60, %v459_v29 }
 0x101   : > { %439 = vrot.lane.b32.xlu1 %v424_v48, %s1138_s27  ;;  %508 = vrot.lane.b32.xlu2 %v493_v38, %s1136_s24  ;;  %v879_v58 = vpop.f32.mrf.mxu3 }
 0x102   : > { %550 = vrot.lane.b32.xlu0 %v535_v26, %s1137_s25  ;;  %v605_v26 = vld [vmem:[%s1761_s2 + $0x10] sm:$0xff] }
 0x103   : > { %668 = vmatpush.msra.mxu1 %v605_v26 }
 0x109   : > { %357 = vrot.lane.b32.xlu1 %v342_v2, %s1136_s24  ;;  %399 = vrot.lane.b32.xlu2 %v384_v3, %s1137_s25  ;;  %v882_v6 = vpop.f32.mrf.mxu3 }
 0x10a   : > { %441 = vrot.lane.b32.xlu0 %v1502_v27, %s1138_s27  ;;  %v604_v27 = vld [vmem:[%s1761_s2 + $0x8] sm:$0xff] }
 0x10b   : > { %669 = vmatpush.msra.mxu1 %v604_v27 }
 0x10d   : > { %670 = vmatpush.msra.mxu1 %v603_v28 }
 0x111   : > { %905 = vrot.lane.b32.xlu1 %v873_v39, %s1138_s27  ;;  %907 = vrot.lane.b32.xlu2 %v876_v50, %s1138_s27  ;;  %v885_v26 = vpop.f32.mrf.mxu3 }
 0x112   : > { %909 = vrot.lane.b32.xlu0 %v879_v58, %s1138_s27 }
 0x119   : > { %911 = vrot.lane.b32.xlu1 %v882_v6, %s1138_s27  ;;  %913 = vrot.lane.b32.xlu2 %v885_v26, %s1138_s27 }
 0x11b   : > { %v1095_v22 = vpop.permute.xlu2 %1094 }
 0x11c   : > { %v1096_v56 = vunpack.i.l.bf16 %v1095_v22  ;;  %v1097_v2 = vunpack.i.h.bf16 %v1095_v22 }
 0x123   : > { %v497_v18 = vpop.permute.xlu2 %496 }
 0x124   : > { %v588_v36 = vsel %vm560_vm8, %v456_v51, %v497_v18 }
 0x129   : > { %v495_v23 = vpop.permute.xlu0 %494 }
 0x12a   : > { %v587_v42 = vsel %vm560_vm8, %v454_v41, %v495_v23 }
 0x12b   : > { %v541_v47 = vpop.permute.xlu2 %540 }
 0x131   : > { %v537_v32 = vpop.permute.xlu0 %536 }
 0x132   : > { %v595_v44 = vsel %vm569_vm7, %v587_v42, %v537_v32  ;;  %v462_v42 = vsel %vm451_vm6, %v459_v29, %v461_v40 }
 0x133   : > { %1058 = vmatmul.msk.f32.vlgmr.msra.gmra.mxu2 %vm578_vm9, %v595_v44  ;;  %v1085_v45 = vpop.permute.xlu1 %1084  ;;  %v1110_v38 = vpop.permute.xlu2 %1109 }
 0x134   : > { %v1086_v37 = vunpack.i.l.bf16 %v1085_v45  ;;  %v1087_v48 = vunpack.i.h.bf16 %v1085_v45  ;;  %v1111_v11 = vunpack.i.l.bf16 %v1110_v38  ;;  %v1112_v39 = vunpack.i.h.bf16 %v1110_v38 }
 0x136   : > { %v561_v57 = vsel %vm560_vm8, %v1343_v10, %v1086_v37  ;;  %v562_v63 = vsel %vm560_vm8, %v1346_v13, %v1087_v48 }
 0x139   : > { %v539_v33 = vpop.permute.xlu0 %538 }
 0x13a   : > { %v596_v52 = vsel %vm569_vm7, %v588_v36, %v539_v33 }
 0x13b   : > { %1059 = vmatmul.msk.f32.gmra.mxu2 %vm578_vm9, %v596_v52  ;;  %v1090_v53 = vpop.permute.xlu1 %1089  ;;  %v503_v8 = vpop.permute.xlu2 %502 }
 0x13c   : > { %v1091_v54 = vunpack.i.l.bf16 %v1090_v53  ;;  %v1092_v25 = vunpack.i.h.bf16 %v1090_v53  ;;  %v463_v53 = vrot.slane %v1458_v55, 4 }
 0x13e   : > { %v570_v43 = vsel %vm569_vm7, %v561_v57, %v1091_v54  ;;  %v571_v1 = vsel %vm569_vm7, %v562_v63, %v1092_v25 }
 0x13f   : > { %v579_v59 = vsel %vm578_vm9, %v570_v43, %v1096_v56  ;;  %v580_v4 = vsel %vm578_vm9, %v571_v1, %v1097_v2  ;;  %v464_v43 = vsel %vm451_vm6, %v461_v40, %v463_v53 }
 0x140   : > { %671 = vmatmul.f32.vlgmr.msra.gmra.mxu1 %v579_v59 }
 0x143   : > { %v499_v35 = vpop.permute.xlu1 %498  ;;  %v1120_v27 = vpop.permute.xlu2 %1119 }
 0x144   : > { %v589_v10 = vsel %vm560_vm8, %v458_v61, %v499_v35  ;;  %v1100_v0 = vpop.permute.xlu0 %1099  ;;  %v1121_v50 = vunpack.i.l.bf16 %v1120_v27  ;;  %v1122_v57 = vunpack.i.h.bf16 %v1120_v27  ;;  %v466_v61 = vsel %vm451_vm6, %v463_v53, %v465_v31 }
 0x145   : > { %v597_v3 = vsel %vm569_vm7, %v589_v10, %v541_v47  ;;  %v1101_v9 = vunpack.i.l.bf16 %v1100_v0  ;;  %v1102_v19 = vunpack.i.h.bf16 %v1100_v0 }
 0x146   : > { %1060 = vmatmul.msk.f32.gmra.mxu2 %vm578_vm9, %v597_v3 }
 0x147   : > { %v563_v16 = vsel %vm560_vm8, %v1361_v30, %v1101_v9  ;;  %v564_v23 = vsel %vm560_vm8, %v1394_v62, %v1102_v19  ;;  %v591_v62 = vsel %vm560_vm8, %v462_v42, %v503_v8 }
 0x148   : > { %674 = vmatmul.f32.gmra.mxu1 %v580_v4 }
 0x14a   : > { %v888_v32 = vpop.f32.mrf.mxu3 }
 0x14b   : > { %v1105_v12 = vpop.permute.xlu1 %1104  ;;  %915 = vrot.lane.b32.xlu0 %v888_v32, %s1138_s27  ;;  %v547_v51 = vpop.permute.xlu2 %546 }
 0x14c   : > { %v1106_v13 = vunpack.i.l.bf16 %v1105_v12  ;;  %v501_v15 = vpop.permute.xlu0 %500  ;;  %v1107_v21 = vunpack.i.h.bf16 %v1105_v12 }
 0x14d   : > { %v590_v28 = vsel %vm560_vm8, %v460_v24, %v501_v15 }
 0x14e   : > { %v572_v17 = vsel %vm569_vm7, %v563_v16, %v1106_v13  ;;  %v573_v34 = vsel %vm569_vm7, %v564_v23, %v1107_v21 }
 0x14f   : > { %v581_v20 = vsel %vm578_vm9, %v572_v17, %v1111_v11  ;;  %v582_v41 = vsel %vm578_vm9, %v573_v34, %v1112_v39 }
 0x150   : > { %677 = vmatmul.f32.gmra.mxu1 %v581_v20 }
 0x152   : > { %v891_v60 = vpop.f32.mrf.mxu3 }
 0x153   : > { %v543_v22 = vpop.permute.xlu1 %542  ;;  %917 = vrot.lane.b32.xlu1 %v891_v60, %s1138_s27  ;;  %v356_v35 = vpop.permute.xlu2 %355 }
 0x154   : > { %v545_v30 = vpop.permute.xlu0 %544  ;;  %v598_v18 = vsel %vm569_vm7, %v590_v28, %v543_v22  ;;  %v567_v3 = vsel %vm560_vm8, %v1458_v55, %v356_v35 }
 0x155   : > { %1061 = vmatmul.msk.f32.gmra.mxu2 %vm578_vm9, %v598_v18  ;;  %v599_v47 = vsel %vm569_vm7, %v591_v62, %v545_v30 }
 0x158   : > { %680 = vmatmul.f32.gmra.mxu1 %v582_v41 }
 0x15b   : > { %v1115_v44 = vpop.permute.xlu1 %1114  ;;  %v509_v2 = vpop.permute.xlu2 %508 }
 0x15c   : > { %v1125_v45 = vpop.permute.xlu0 %1124  ;;  %v1116_v46 = vunpack.i.l.bf16 %v1115_v44  ;;  %v1117_v37 = vunpack.i.h.bf16 %v1115_v44  ;;  %v594_v8 = vsel %vm560_vm8, %v1512_v14, %v509_v2 }
 0x15d   : > { %1062 = vmatmul.msk.f32.gmra.mxu2 %vm578_vm9, %v599_v47  ;;  %v1126_v36 = vunpack.i.l.bf16 %v1125_v45  ;;  %v1127_v25 = vunpack.i.h.bf16 %v1125_v45 }
 0x15e   : > { %v565_v33 = vsel %vm560_vm8, %v1405_v7, %v1116_v46  ;;  %v566_v56 = vsel %vm560_vm8, %v1444_v49, %v1117_v37 }
 0x15f   : > { %v574_v52 = vsel %vm569_vm7, %v565_v33, %v1121_v50  ;;  %v575_v7 = vsel %vm569_vm7, %v566_v56, %v1122_v57 }
 0x160   : > { %v583_v54 = vsel %vm578_vm9, %v574_v52, %v1126_v36  ;;  %v584_v49 = vsel %vm578_vm9, %v575_v7, %v1127_v25 }
 0x161   : > { %683 = vmatmul.f32.gmra.mxu1 %v583_v54 }
 0x163   : > { %v505_v58 = vpop.permute.xlu1 %504  ;;  %v400_v15 = vpop.permute.xlu2 %399 }
 0x164   : > { %v592_v48 = vsel %vm560_vm8, %v464_v43, %v505_v58  ;;  %v507_v38 = vpop.permute.xlu0 %506 }
 0x165   : > { %v600_v59 = vsel %vm569_vm7, %v592_v48, %v547_v51  ;;  %v593_v63 = vsel %vm560_vm8, %v466_v61, %v507_v38 }
 0x166   : > { %1063 = vmatmul.msk.f32.gmra.mxu2 %vm578_vm9, %v600_v59 }
 0x167   : > { %v894_v14 = vpop.f32.mrf.mxu3 }
 0x168   : > { %919 = vrot.lane.b32.xlu2 %v894_v14, %s1138_s27 }
 0x169   : > { %686 = vmatmul.f32.gmra.mxu1 %v584_v49 }
 0x16b   : > { %v549_v10 = vpop.permute.xlu1 %548  ;;  %v908_v28 = vpop.permute.xlu2 %907 }
 0x16c   : > { %v398_v0 = vpop.permute.xlu0 %397  ;;  %v601_v1 = vsel %vm569_vm7, %v593_v63, %v549_v10 }
 0x16d   : > { %v576_v4 = vsel %vm569_vm7, %v567_v3, %v398_v0 }
 0x16e   : > { %1064 = vmatmul.msk.f32.gmra.mxu2 %vm578_vm9, %v601_v1 }
 0x173   : > { %v440_v6 = vpop.permute.xlu1 %439  ;;  %v914_v47 = vpop.permute.xlu2 %913 }
 0x174   : > { %v551_v9 = vpop.permute.xlu0 %550  ;;  %v585_v31 = vsel %vm578_vm9, %v576_v4, %v440_v6 }
 0x175   : > { %689 = vmatmul.f32.gmra.mxu1 %v585_v31  ;;  %v602_v12 = vsel %vm569_vm7, %v594_v8, %v551_v9 }
 0x176   : > { %1065 = vmatmul.msk.f32.gmra.mxu2 %vm578_vm9, %v602_v12 }
 0x17b   : > { %v358_v13 = vpop.permute.xlu1 %357 }
 0x17c   : > { %v568_v55 = vsel %vm560_vm8, %v1477_v5, %v358_v13  ;;  %v442_v11 = vpop.permute.xlu0 %441 }
 0x17d   : > { %v577_v16 = vsel %vm569_vm7, %v568_v55, %v400_v15 }
 0x17e   : > { %v586_v29 = vsel %vm578_vm9, %v577_v16, %v442_v11 }
 0x17f   : > { %692 = vmatmul.f32.gmra.mxu1 %v586_v29 }
 0x183   : > { %v906_v20 = vpop.permute.xlu1 %905 }
 0x184   : > { %v910_v23 = vpop.permute.xlu0 %909 }
 0x18b   : > { %v912_v42 = vpop.permute.xlu1 %911 }
 0x1b6   : > { %v713_v17 = vpop.f32.mrf.mxu2 }
 0x1bd   : > { %v672_v19 = vpop.f32.mrf.mxu1  ;;  %v916_v51 = vpop.permute.xlu0 %915 }
 0x1be   : > { %v714_v5 = vadd.f32 %v713_v17, %v672_v19  ;;  %v716_v24 = vpop.f32.mrf.mxu2 }
 0x1c0   : > { %v929_v21 = vsel %vm578_vm9, %v714_v5, %v906_v20 }
 0x1c1   : > { %937 = vst [vmem:[%s1727_s28] sm:$0xff] %v929_v21  ;;  %v958_v58 = vmul.f32 %v929_v21, %v929_v21 }
 0x1c2   : > { %v920_v1 = vpop.permute.xlu2 %919 }
 0x1c5   : > { %v675_v26 = vpop.f32.mrf.mxu1  ;;  %v918_v57 = vpop.permute.xlu1 %917 }
 0x1c6   : > { %v717_v27 = vadd.f32 %v716_v24, %v675_v26 }
 0x1c8   : > { %v930_v22 = vsel %vm578_vm9, %v717_v27, %v908_v28 }
 0x1c9   : > { %938 = vst [vmem:[%s1727_s28 + $0x8] sm:$0xff] %v930_v22  ;;  %v719_v30 = vpop.f32.mrf.mxu2  ;;  %v959_v54 = vmul.f32 %v930_v22, %v930_v22  ;;  %v945_v48 = vadd.f32 %v930_v22, %v929_v21 }
 0x1cb   : > { %v966_v60 = vadd.f32 %v959_v54, %v958_v58 }
 0x1cd   : > { %v678_v18 = vpop.f32.mrf.mxu1 }
 0x1ce   : > { %v720_v34 = vadd.f32 %v719_v30, %v678_v18 }
 0x1d0   : > { %v931_v39 = vsel %vm578_vm9, %v720_v34, %v910_v23 }
 0x1d1   : > { %939 = vst [vmem:[%s1727_s28 + $0x10] sm:$0xff] %v931_v39  ;;  %v960_v38 = vmul.f32 %v931_v39, %v931_v39  ;;  %v946_v7 = vadd.f32 %v945_v48, %v931_v39 }
 0x1d3   : > { %v967_v35 = vadd.f32 %v966_v60, %v960_v38 }
 0x1d5   : > { %v681_v40 = vpop.f32.mrf.mxu1 }
 0x1d8   : > { %v722_v41 = vpop.f32.mrf.mxu2 }
 0x1d9   : > { %v723_v32 = vadd.f32 %v722_v41, %v681_v40 }
 0x1db   : > { %v932_v62 = vsel %vm578_vm9, %v723_v32, %v912_v42 }
 0x1dc   : > { %940 = vst [vmem:[%s1727_s28 + $0x18] sm:$0xff] %v932_v62  ;;  %v961_v25 = vmul.f32 %v932_v62, %v932_v62  ;;  %v947_v49 = vadd.f32 %v946_v7, %v932_v62 }
 0x1de   : > { %v684_v44 = vpop.f32.mrf.mxu1  ;;  %v968_v63 = vadd.f32 %v967_v35, %v961_v25 }
 0x1e0   : > { %v725_v45 = vpop.f32.mrf.mxu2 }
 0x1e1   : > { %v726_v46 = vadd.f32 %v725_v45, %v684_v44 }
 0x1e3   : > { %v933_v50 = vsel %vm578_vm9, %v726_v46, %v914_v47 }
 0x1e4   : > { %941 = vst [vmem:[%s1727_s28 + $0x20] sm:$0xff] %v933_v50  ;;  %v962_v61 = vmul.f32 %v933_v50, %v933_v50  ;;  %v948_v10 = vadd.f32 %v947_v49, %v933_v50 }
 0x1e6   : > { %v687_v36 = vpop.f32.mrf.mxu1  ;;  %v969_v3 = vadd.f32 %v968_v63, %v962_v61 }
 0x1e9   : > { %v728_v37 = vpop.f32.mrf.mxu2 }
 0x1ea   : > { %v729_v33 = vadd.f32 %v728_v37, %v687_v36 }
 0x1ec   : > { %v934_v52 = vsel %vm578_vm9, %v729_v33, %v916_v51 }
 0x1ed   : > { %942 = vst [vmem:[%s1727_s28 + $0x28] sm:$0xff] %v934_v52  ;;  %v963_v0 = vmul.f32 %v934_v52, %v934_v52  ;;  %v949_v2 = vadd.f32 %v948_v10, %v934_v52 }
 0x1ef   : > { %v970_v31 = vadd.f32 %v969_v3, %v963_v0 }
 0x1f1   : > { %v731_v53 = vpop.f32.mrf.mxu2 }
 0x1f2   : > { %v690_v56 = vpop.f32.mrf.mxu1 }
 0x1f3   : > { %v732_v43 = vadd.f32 %v731_v53, %v690_v56 }
 0x1f5   : > { %v935_v59 = vsel %vm578_vm9, %v732_v43, %v918_v57 }
 0x1f6   : > { %943 = vst [vmem:[%s1727_s28 + $0x30] sm:$0xff] %v935_v59  ;;  %v964_v4 = vmul.f32 %v935_v59, %v935_v59  ;;  %v950_v12 = vadd.f32 %v949_v2, %v935_v59 }
 0x1f8   : > { %v971_v15 = vadd.f32 %v970_v31, %v964_v4 }
 0x1f9   : > { %v734_v6 = vpop.f32.mrf.mxu2 }
 0x1fc   : > { %v693_v8 = vpop.f32.mrf.mxu1 }
 0x1fd   : > { %v735_v9 = vadd.f32 %v734_v6, %v693_v8 }
 0x1ff   : > { %v936_v13 = vsel %vm578_vm9, %v735_v9, %v920_v1 }
 0x200   : > { %944 = vst [vmem:[%s1727_s28 + $0x38] sm:$0xff] %v936_v13  ;;  %v951_v55 = vadd.f32 %v950_v12, %v936_v13  ;;  %v965_v11 = vmul.f32 %v936_v13, %v936_v13 }
 0x202   : > { %v952_v16 = vrot.slane %v951_v55, 4  ;;  %v972_v29 = vadd.f32 %v971_v15, %v965_v11 }
 0x204   : > { %v953_v14 = vadd.f32 %v952_v16, %v951_v55  ;;  %v973_v17 = vrot.slane %v972_v29, 4 }
 0x206   : > { %v954_v19 = vrot.slane %v953_v14, 2  ;;  %v974_v20 = vadd.f32 %v973_v17, %v972_v29 }
 0x208   : > { %v955_v5 = vadd.f32 %v954_v19, %v953_v14  ;;  %v975_v21 = vrot.slane %v974_v20, 2 }
 0x20a   : > { %v956_v24 = vrot.slane %v955_v5, 1  ;;  %v976_v26 = vadd.f32 %v975_v21, %v974_v20 }
 0x20c   : > { %v977_v27 = vrot.slane %v976_v26, 1  ;;  %v957_v28 = vadd.f32 %v956_v24, %v955_v5  ;;  %983 = sbr.rel (%p1066_p4) target bundleno = 531 (0x213), region = 40 }
 0x20e   : > { %v978_v22 = vadd.f32 %v977_v27, %v976_v26 }
 0x210   : > { %v979_v23 = vsel %vm745_vm0, %v957_v28, %v978_v22 }
 0x211   : > { %v1139_v30 = vmov 0.0  }
 0x212   : > { %984 = vst [vmem:[%s1764_s5] sm:$0x3] %v1139_v30 }
 0x213 PF:  {}
 0x219   : > { %v985_v18 = vld [vmem:[%s1764_s5] sm:$0x3] }
 0x21a   : > { %v986_v34 = vadd.f32 %v985_v18, %v979_v23 }
 0x21c   : > { %987 = vst [vmem:[%s1764_s5] sm:$0x3] %v986_v34 }
 0x21d PF: > { %s16_s18 = sadd.s32 1, %s1134_s18  }
 0x21e   : > { %p13_p5 = scmp.ge.s32.totalorder %s16_s18, 4  }
 0x220   :  { %15 = sbr.rel (!%p13_p5) target bundleno = 1 (0x1), region = 78 }

// kernel: inception_backbone.15
= control target key start
LH: loop header
LB: loop body
LE: loop exit
PB: predicated region body
PF: predicated region fallthrough
CT: control target
= control target key end

     0   :  { %s356_s0 = inlined_call_operand.vmem [shape: f32[128,128], index: 0, kind: input, shape index: {}]   ;;  %s357_s1 = inlined_call_operand.vmem [shape: f32[128,128], index: 1, kind: input, shape index: {}]   ;;  %s358_s2 = inlined_call_operand.vmem [shape: f32[1,128], index: 2, kind: input, shape index: {}]   ;;  %s359_s3 = inlined_call_operand.vmem [shape: f32[1,128], index: 3, kind: input, shape index: {}]   ;;  %s360_s4 = inlined_call_operand.hbm [shape: f32[128,128], index: 4, kind: output, shape index: {}]  }
   0x1   :  { %v18_v0 = vld [vmem:[%s357_s1] sm:$0xff]  ;;  %v19_v4 = vld [vmem:[%s357_s1 + $0x8] sm:$0xff]  ;;  %v20_v6 = vld [vmem:[%s357_s1 + $0x10] sm:$0xff] }
   0x2   :  { %v34_v1 = vld [vmem:[%s356_s0] sm:$0xff]  ;;  %v35_v5 = vld [vmem:[%s356_s0 + $0x8] sm:$0xff]  ;;  %v36_v9 = vld [vmem:[%s356_s0 + $0x10] sm:$0xff] }
   0x3   :  { %v224_v2 = vld [vmem:[%s358_s2] ss:$0 sm:$0xff]  ;;  %v21_v10 = vld [vmem:[%s357_s1 + $0x18] sm:$0xff]  ;;  %v23_v16 = vld [vmem:[%s357_s1 + $0x28] sm:$0xff] }
   0x4   :  { %v229_v3 = vld [vmem:[%s359_s3] ss:$0 sm:$0xff]  ;;  %v54_v7 = vmul.f32 %v224_v2, %v34_v1  ;;  %v55_v8 = vmul.f32 %v224_v2, %v35_v5  ;;  %v37_v11 = vld [vmem:[%s356_s0 + $0x18] sm:$0xff]  ;;  %v56_v12 = vmul.f32 %v224_v2, %v36_v9  ;;  %v39_v20 = vld [vmem:[%s356_s0 + $0x28] sm:$0xff] }
   0x5   :  { %v57_v13 = vmul.f32 %v224_v2, %v37_v11  ;;  %v22_v14 = vld [vmem:[%s357_s1 + $0x20] sm:$0xff]  ;;  %v24_v21 = vld [vmem:[%s357_s1 + $0x30] sm:$0xff]  ;;  %v59_v25 = vmul.f32 %v224_v2, %v39_v20  ;;  %v25_v27 = vld [vmem:[%s357_s1 + $0x38] sm:$0xff] }
   0x6   :  { %v38_v15 = vld [vmem:[%s356_s0 + $0x20] sm:$0xff]  ;;  %v70_v17 = vadd.f32 %v54_v7, %v18_v0  ;;  %v71_v18 = vadd.f32 %v55_v8, %v19_v4  ;;  %v40_v22 = vld [vmem:[%s356_s0 + $0x30] sm:$0xff]  ;;  %v72_v23 = vadd.f32 %v56_v12, %v20_v6  ;;  %v41_v28 = vld [vmem:[%s356_s0 + $0x38] sm:$0xff] }
   0x7   :  { %v58_v19 = vmul.f32 %v224_v2, %v38_v15  ;;  %v73_v24 = vadd.f32 %v57_v13, %v21_v10  ;;  %v60_v26 = vmul.f32 %v224_v2, %v40_v22  ;;  %v61_v32 = vmul.f32 %v224_v2, %v41_v28  ;;  %v26_v37 = vld [vmem:[%s357_s1 + $0x40] sm:$0xff]  ;;  %v43_v39 = vld [vmem:[%s356_s0 + $0x48] sm:$0xff]  ;;  %v44_v45 = vld [vmem:[%s356_s0 + $0x50] sm:$0xff] }
   0x8   :  { %v90_v29 = vadd.f32 %v229_v3, %v70_v17  ;;  %v91_v30 = vadd.f32 %v229_v3, %v71_v18  ;;  %v92_v33 = vadd.f32 %v229_v3, %v72_v23  ;;  %v75_v35 = vadd.f32 %v59_v25, %v23_v16  ;;  %v42_v38 = vld [vmem:[%s356_s0 + $0x40] sm:$0xff]  ;;  %v27_v44 = vld [vmem:[%s357_s1 + $0x48] sm:$0xff]  ;;  %v45_v46 = vld [vmem:[%s356_s0 + $0x58] sm:$0xff] }
   0x9   :  { %v74_v31 = vadd.f32 %v58_v19, %v22_v14  ;;  %v93_v34 = vadd.f32 %v229_v3, %v73_v24  ;;  %v76_v36 = vadd.f32 %v60_v26, %v24_v21  ;;  %v77_v43 = vadd.f32 %v61_v32, %v25_v27  ;;  %v28_v51 = vld [vmem:[%s357_s1 + $0x50] sm:$0xff]  ;;  %v29_v52 = vld [vmem:[%s357_s1 + $0x58] sm:$0xff]  ;;  %v46_v53 = vld [vmem:[%s356_s0 + $0x60] sm:$0xff] }
   0xa   :  { %v106_v40 = vmax.f32 %v90_v29, 0.0  ;;  %v107_v41 = vmax.f32 %v91_v30, 0.0  ;;  %v108_v47 = vmax.f32 %v92_v33, 0.0  ;;  %v95_v49 = vadd.f32 %v229_v3, %v75_v35  ;;  %v30_v58 = vld [vmem:[%s357_s1 + $0x60] sm:$0xff]  ;;  %v47_v59 = vld [vmem:[%s356_s0 + $0x68] sm:$0xff]  ;;  %v48_v60 = vld [vmem:[%s356_s0 + $0x70] sm:$0xff] }
   0xb   :  { %v94_v42 = vadd.f32 %v229_v3, %v74_v31  ;;  %v109_v48 = vmax.f32 %v93_v34, 0.0  ;;  %v96_v50 = vadd.f32 %v229_v3, %v76_v36  ;;  %v97_v55 = vadd.f32 %v229_v3, %v77_v43  ;;  %v49_v1 = vld [vmem:[%s356_s0 + $0x78] sm:$0xff] }
   0xc   :  { %122 = vst [vmem:[#allocation2] sm:$0xff] %v106_v40  ;;  %v62_v56 = vmul.f32 %v224_v2, %v42_v38  ;;  %v63_v57 = vmul.f32 %v224_v2, %v43_v39  ;;  %v111_v61 = vmax.f32 %v95_v49, 0.0  ;;  %v64_v63 = vmul.f32 %v224_v2, %v44_v45 }
   0xd   :  { %v110_v54 = vmax.f32 %v94_v42, 0.0  ;;  %123 = vst [vmem:[#allocation2 + $0x8] sm:$0xff] %v107_v41  ;;  %v112_v62 = vmax.f32 %v96_v50, 0.0  ;;  %v65_v0 = vmul.f32 %v224_v2, %v45_v46 }
   0xe   :  { %9 = vsyncpa [#allocation3], 0  ;;  %124 = vst [vmem:[#allocation2 + $0x10] sm:$0xff] %v108_v47  ;;  %v113_v4 = vmax.f32 %v97_v55, 0.0  ;;  %v78_v5 = vadd.f32 %v62_v56, %v26_v37  ;;  %v79_v6 = vadd.f32 %v63_v57, %v27_v44  ;;  %v66_v7 = vmul.f32 %v224_v2, %v46_v53  ;;  %v31_v8 = vld [vmem:[%s357_s1 + $0x68] sm:$0xff]  ;;  %v32_v9 = vld [vmem:[%s357_s1 + $0x70] sm:$0xff] }
   0xf   :  { %125 = vst [vmem:[#allocation2 + $0x18] sm:$0xff] %v109_v48  ;;  %v80_v10 = vadd.f32 %v64_v63, %v28_v51  ;;  %v81_v11 = vadd.f32 %v65_v0, %v29_v52  ;;  %v67_v12 = vmul.f32 %v224_v2, %v47_v59  ;;  %v68_v13 = vmul.f32 %v224_v2, %v48_v60  ;;  %v33_v14 = vld [vmem:[%s357_s1 + $0x78] sm:$0xff]  ;;  %s144_s27 = sshll.u32 %s360_s4, 4  ;;  %s187_s28 = smov [#allocation2]   ;;  %s145_s27 = int_to_ptr.hbm [resolvable:$true] %s144_s27 }
  0x10   :  { %126 = vst [vmem:[#allocation2 + $0x20] sm:$0xff] %v110_v54  ;;  %v98_v15 = vadd.f32 %v229_v3, %v78_v5  ;;  %v99_v16 = vadd.f32 %v229_v3, %v79_v6  ;;  %v82_v17 = vadd.f32 %v66_v7, %v30_v58  ;;  %v69_v18 = vmul.f32 %v224_v2, %v49_v1  ;;  %s142_s2 = sshll.u32 %s187_s28, 4  ;;  %s188_s29 = smov 128   ;;  %s143_s2 = int_to_ptr.vmem [resolvable:$true] %s142_s2 }
  0x11   :  { %127 = vst [vmem:[#allocation2 + $0x28] sm:$0xff] %v111_v61  ;;  %v100_v19 = vadd.f32 %v229_v3, %v80_v10  ;;  %v101_v20 = vadd.f32 %v229_v3, %v81_v11  ;;  %v83_v21 = vadd.f32 %v67_v12, %v31_v8  ;;  %v84_v22 = vadd.f32 %v68_v13, %v32_v9  ;;  %s189_s3 = smov 8  }
  0x12   :  { %128 = vst [vmem:[#allocation2 + $0x30] sm:$0xff] %v112_v62  ;;  %v114_v23 = vmax.f32 %v98_v15, 0.0  ;;  %v115_v24 = vmax.f32 %v99_v16, 0.0  ;;  %v102_v25 = vadd.f32 %v229_v3, %v82_v17  ;;  %v85_v26 = vadd.f32 %v69_v18, %v33_v14 }
  0x13   :  { %129 = vst [vmem:[#allocation2 + $0x38] sm:$0xff] %v113_v4  ;;  %v116_v27 = vmax.f32 %v100_v19, 0.0  ;;  %v117_v28 = vmax.f32 %v101_v20, 0.0  ;;  %v103_v29 = vadd.f32 %v229_v3, %v83_v21  ;;  %v104_v2 = vadd.f32 %v229_v3, %v84_v22 }
  0x14   :  { %130 = vst [vmem:[#allocation2 + $0x40] sm:$0xff] %v114_v23  ;;  %v118_v30 = vmax.f32 %v102_v25, 0.0  ;;  %v105_v31 = vadd.f32 %v229_v3, %v85_v26 }
  0x15   :  { %131 = vst [vmem:[#allocation2 + $0x48] sm:$0xff] %v115_v24  ;;  %v119_v32 = vmax.f32 %v103_v29, 0.0  ;;  %v120_v33 = vmax.f32 %v104_v2, 0.0 }
  0x16   :  { %132 = vst [vmem:[#allocation2 + $0x50] sm:$0xff] %v116_v27  ;;  %v121_v34 = vmax.f32 %v105_v31, 0.0 }
  0x17   :  { %133 = vst [vmem:[#allocation2 + $0x58] sm:$0xff] %v117_v28 }
  0x18   :  { %134 = vst [vmem:[#allocation2 + $0x60] sm:$0xff] %v118_v30 }
  0x19   :  { %135 = vst [vmem:[#allocation2 + $0x68] sm:$0xff] %v119_v32 }
  0x1a   :  { %136 = vst [vmem:[#allocation2 + $0x70] sm:$0xff] %v120_v33 }
  0x1b   :  { %137 = vst [vmem:[#allocation2 + $0x78] sm:$0xff] %v121_v34 }
  0x1c   :  { %150 = dma.vmem_to_hbm [thread:$0]  %s143_s2, 2048, %s145_s27, [#allocation3], %s188_s29, %s188_s29, %s189_s3  }
  0x1d   :  { %185 = dma.done.wait [#allocation3], 2048  }
  0x1e   :  { %186 = vsyncadd [#allocation3], 4294965248 }
  0x1f   :  { %155 = vsyncpa [#allocation3], 1 }

</bundles_post_ra>
